<compile_context>
chip_gen: v7x
topology: tpu7x:2x2x1
jax: 0.10.0
libtpu: 0.0.40
codegen_flags: <defaults>
</compile_context>

<pallas_src>
import functools

import jax
import jax.numpy as jnp
from jax import lax
from jax.experimental import pallas as pl
from jax.experimental.pallas import tpu as pltpu

# hyperparameters (synthetic, small)
NUM_EMBEDDING_DIMENSIONS = 32   # C
BLOCK_SIZE = 8                  # T (max sequence length)
HEAD_SIZE = 16                  # head_size
DROPOUT = 0.0                   # TODO(synk): dropout is identity in eval mode; not applied in-kernel


def head_kernel(x_ref, w_ref, o_ref, *, bb, t, h):
    # x_ref: (bb*t, C) — rows of `bb` sequences stacked along sublanes
    # w_ref: (C, 3h)   — fused [q | k | v] weights; q columns pre-scaled by C**-0.5
    # o_ref: (bb, t, h)
    xf = x_ref[...]                                                       # (rb, C)

    # one fused QKV projection on the MXU
    qkv = jnp.dot(xf, w_ref[...], preferred_element_type=jnp.float32)    # (rb, 3h)
    qkv3 = qkv.reshape(bb, t, 3 * h)        # sublane regroup; lane dim unchanged
    q = qkv3[:, :, 0:h]                     # already carries the C**-0.5 scale
    k = qkv3[:, :, h:2 * h]
    v = qkv3[:, :, 2 * h:3 * h]

    # batched q @ k^T, contracting on H (no materialized transpose)
    scores = lax.dot_general(
        q, k, dimension_numbers=(((2,), (2,)), ((0,), (0,))),
        preferred_element_type=jnp.float32)                               # (bb, t, t)

    # causal mask: keep where row >= col (built once, broadcast over batch)
    row = lax.broadcasted_iota(jnp.int32, (t, t), 0)
    col = lax.broadcasted_iota(jnp.int32, (t, t), 1)
    scores = jnp.where((row >= col)[None, :, :], scores, -jnp.inf)

    # numerically stable softmax; reciprocal runs on the (otherwise idle) EUP
    m = jnp.max(scores, axis=-1, keepdims=True)
    e = jnp.exp(scores - m)
    s = jnp.sum(e, axis=-1, keepdims=True)
    p = e * pl.reciprocal(s, approx=True)

    out = lax.dot_general(
        p, v, dimension_numbers=(((2,), (1,)), ((0,), (0,))),
        preferred_element_type=jnp.float32)                               # (bb, t, h)
    o_ref[...] = out.astype(o_ref.dtype)


def head_forward(x, wk, wq, wv, *, target_rows=256):
    """x: (B, T, C); wk/wq/wv: (C, H) (already transposed vs. torch Linear).
    Returns (B, T, H)."""
    B, T, C = x.shape
    H = wk.shape[1]

    # fold the C**-0.5 attention scale into the query weight (constant fold),
    # and fuse the three projections into a single (C, 3H) weight.
    w_qkv = jnp.concatenate([wq * (C ** -0.5), wk, wv], axis=1)           # (C, 3H)

    # sequences per grid step: largest divisor of B giving >= target_rows rows
    bb = min(B, max(1, target_rows // T))
    while B % bb:
        bb -= 1
    rb = bb * T

    x2d = x.reshape(B * T, C)                                             # free reshape in XLA

    return pl.pallas_call(
        functools.partial(head_kernel, bb=bb, t=T, h=H),
        out_shape=jax.ShapeDtypeStruct((B, T, H), x.dtype),
        grid_spec=pltpu.PrefetchScalarGridSpec(
            num_scalar_prefetch=0,
            grid=(B // bb,),
            in_specs=[
                pl.BlockSpec((rb, C), lambda i: (i, 0)),        # row-block of bb sequences
                pl.BlockSpec((C, 3 * H), lambda i: (0, 0)),     # fused weights, resident
            ],
            out_specs=pl.BlockSpec((bb, T, H), lambda i: (i, 0, 0)),
        ),
        compiler_params=pltpu.CompilerParams(
            dimension_semantics=("parallel",)),
    )(x2d, w_qkv)


def head_reference(x, wk, wq, wv):
    """Plain-JAX reference matching the PyTorch forward exactly (eval mode)."""
    B, T, C = x.shape
    k = x @ wk
    q = x @ wq
    v = x @ wv
    wei = (q @ jnp.swapaxes(k, -2, -1)) * (C ** -0.5)
    mask = jnp.tril(jnp.ones((T, T), dtype=bool))
    wei = jnp.where(mask, wei, -jnp.inf)
    wei = jax.nn.softmax(wei, axis=-1)
    return wei @ v


if __name__ == "__main__":
    key = jax.random.PRNGKey(0)
    kx, kk, kq, kv = jax.random.split(key, 4)

    # B is arbitrary for this module; 64 sequences exercise the row-batched
    # tiling (2 grid steps x 256 rows) while staying tiny (64 KiB of input).
    B, T, C, H = 64, BLOCK_SIZE, NUM_EMBEDDING_DIMENSIONS, HEAD_SIZE
    x = jax.random.normal(kx, (B, T, C), dtype=jnp.float32)
    # nn.Linear(C, H, bias=False) weight is (H, C); y = x @ W^T.
    # Store the transposed (C, H) form directly.
    wk = (jax.random.normal(kk, (H, C), dtype=jnp.float32) * (C ** -0.5)).T
    wq = (jax.random.normal(kq, (H, C), dtype=jnp.float32) * (C ** -0.5)).T
    wv = (jax.random.normal(kv, (H, C), dtype=jnp.float32) * (C ** -0.5)).T

    out = head_forward(x, wk, wq, wv)
    jax.block_until_ready(out)

    ref = head_reference(x, wk, wq, wv)
    assert out.shape == (B, T, H)
    # tolerance accounts for the EUP approximate reciprocal in the softmax;
    # real bugs (mask/scale/matmul) produce O(0.1-1) errors and still trip this.
    assert jnp.allclose(out, ref, atol=5e-3, rtol=5e-3), "mismatch vs reference"

    print("KERNEL_OK")
</pallas_src>

<mosaic_0001>
module attributes {stable_mosaic.version = 11 : i64} {
  func.func @head_kernel(%arg0: i32, %arg1: memref<256x32xf32, #tpu.memory_space<vmem>>, %arg2: memref<32x48xf32, #tpu.memory_space<vmem>>, %arg3: memref<32x8x16xf32, #tpu.memory_space<vmem>>) attributes {dimension_semantics = [#tpu.dimension_semantics<parallel>], iteration_bounds = array<i64: 2>, scalar_prefetch = 0 : i64, scratch_operands = 0 : i64, tpu.core_type = #tpu.core_type<tc>, window_params = [{transform_indices = @transform_0, window_bounds = array<i64: 256, 32>}, {pipeline_mode = #tpu.pipeline_mode<synchronous>, transform_indices = @transform_1, window_bounds = array<i64: 32, 48>}, {transform_indices = @transform_2, window_bounds = array<i64: 32, 8, 16>}]} {
    %c0 = arith.constant 0 : index
    %c0_0 = arith.constant 0 : index
    %0 = vector.load %arg1[%c0, %c0_0] : memref<256x32xf32, #tpu.memory_space<vmem>>, vector<256x32xf32>
    %c0_1 = arith.constant 0 : index
    %c0_2 = arith.constant 0 : index
    %1 = vector.load %arg2[%c0_1, %c0_2] : memref<32x48xf32, #tpu.memory_space<vmem>>, vector<32x48xf32>
    %cst = arith.constant dense<0.000000e+00> : vector<256x48xf32>
    %2 = tpu.matmul %0, %1, %cst {dimension_numbers = #tpu.dot_dimension_numbers<[1], [0], [0], [1], [0, 0, 1, 1], [], []>} : vector<256x32xf32>, vector<32x48xf32>, vector<256x48xf32> -> vector<256x48xf32>
    %3 = vector.shape_cast %2 : vector<256x48xf32> to vector<32x8x48xf32>
    %4 = vector.extract_strided_slice %3 {offsets = [0, 0, 0], sizes = [32, 8, 16], strides = [1, 1, 1]} : vector<32x8x48xf32> to vector<32x8x16xf32>
    %5 = vector.extract_strided_slice %3 {offsets = [0, 0, 16], sizes = [32, 8, 16], strides = [1, 1, 1]} : vector<32x8x48xf32> to vector<32x8x16xf32>
    %6 = vector.extract_strided_slice %3 {offsets = [0, 0, 32], sizes = [32, 8, 16], strides = [1, 1, 1]} : vector<32x8x48xf32> to vector<32x8x16xf32>
    %cst_3 = arith.constant dense<0.000000e+00> : vector<32x8x8xf32>
    %7 = tpu.matmul %4, %5, %cst_3 {dimension_numbers = #tpu.dot_dimension_numbers<[2], [2], [1], [1], [0, 0, 0, 1, 1, 1], [0], [0]>} : vector<32x8x16xf32>, vector<32x8x16xf32>, vector<32x8x8xf32> -> vector<32x8x8xf32>
    %8 = tpu.iota {dimensions = array<i32: 0>} : vector<8x8xi32>
    %9 = tpu.iota {dimensions = array<i32: 1>} : vector<8x8xi32>
    %10 = arith.cmpi sge, %8, %9 : vector<8x8xi32>
    %11 = vector.shape_cast %10 : vector<8x8xi1> to vector<1x8x8xi1>
    %cst_4 = arith.constant 0xFF800000 : f32
    %12 = vector.shape_cast %11 : vector<1x8x8xi1> to vector<1x8x8xi1>
    %13 = vector.broadcast %12 : vector<1x8x8xi1> to vector<32x8x8xi1>
    %14 = vector.broadcast %cst_4 : f32 to vector<32x8x8xf32>
    %15 = arith.select %13, %7, %14 : vector<32x8x8xi1>, vector<32x8x8xf32>
    %cst_5 = arith.constant dense<0xFF800000> : vector<32x8xf32>
    %16 = vector.multi_reduction <maximumf>, %15, %cst_5 [2] : vector<32x8x8xf32> to vector<32x8xf32>
    %17 = vector.shape_cast %16 : vector<32x8xf32> to vector<32x8x1xf32>
    %18 = vector.broadcast %17 : vector<32x8x1xf32> to vector<32x8x8xf32>
    %19 = arith.subf %15, %18 : vector<32x8x8xf32>
    %20 = math.exp %19 : vector<32x8x8xf32>
    %cst_6 = arith.constant dense<0.000000e+00> : vector<32x8xf32>
    %21 = vector.multi_reduction <add>, %20, %cst_6 [2] : vector<32x8x8xf32> to vector<32x8xf32>
    %22 = vector.shape_cast %21 : vector<32x8xf32> to vector<32x8x1xf32>
    %23 = tpu.reciprocal %22 {approx = true} : vector<32x8x1xf32> -> vector<32x8x1xf32>
    %24 = vector.broadcast %23 : vector<32x8x1xf32> to vector<32x8x8xf32>
    %25 = arith.mulf %20, %24 : vector<32x8x8xf32>
    %cst_7 = arith.constant dense<0.000000e+00> : vector<32x8x16xf32>
    %26 = tpu.matmul %25, %6, %cst_7 {dimension_numbers = #tpu.dot_dimension_numbers<[2], [1], [1], [2], [0, 0, 0, 1, 1, 2], [0], [0]>} : vector<32x8x8xf32>, vector<32x8x16xf32>, vector<32x8x16xf32> -> vector<32x8x16xf32>
    %c0_8 = arith.constant 0 : index
    %c0_9 = arith.constant 0 : index
    %c0_10 = arith.constant 0 : index
    %27 = vector.load %arg3[%c0_8, %c0_9, %c0_10] : memref<32x8x16xf32, #tpu.memory_space<vmem>>, vector<32x8x16xf32>
    tpu.vector_store %arg3[%c0_8, %c0_9, %c0_10], %26 {strides = array<i32>} : memref<32x8x16xf32, #tpu.memory_space<vmem>>, vector<32x8x16xf32>,
    return
  }
  func.func @transform_0(%arg0: i32) -> (i32, i32) {
    %c0_i32 = arith.constant 0 : i32
    %c0_i32_0 = arith.constant 0 : i32
    return %arg0, %c0_i32 : i32, i32
  }
  func.func @transform_1(%arg0: i32) -> (i32, i32) {
    %c0_i32 = arith.constant 0 : i32
    %c0_i32_0 = arith.constant 0 : i32
    %c0_i32_1 = arith.constant 0 : i32
    return %c0_i32, %c0_i32_0 : i32, i32
  }
  func.func @transform_2(%arg0: i32) -> (i32, i32, i32) {
    %c0_i32 = arith.constant 0 : i32
    %c0_i32_0 = arith.constant 0 : i32
    %c0_i32_1 = arith.constant 0 : i32
    return %arg0, %c0_i32, %c0_i32_0 : i32, i32, i32
  }
}

</mosaic_0001>

<bundles_post_ra>
// kernel: tpu_custom_call.1
= control target key start
LH: loop header
LB: loop body
LE: loop exit
PB: predicated region body
PF: predicated region fallthrough
CT: control target
= control target key end

     0   :  { %s6736_s9 = smov 0   ;;  %s7885_s0 = inlined_call_operand.vmem [shape: f32[512,32], index: 0, kind: input, shape index: {}]   ;;  %s7886_s1 = inlined_call_operand.vmem [shape: f32[32,48], index: 1, kind: input, shape index: {}]   ;;  %s7887_s2 = inlined_call_operand.vmem [shape: f32[64,8,16], index: 2, kind: output, shape index: {}]  }
   0x1 LB: > { %s5882_s10 = sadd.s32 4294967295, %s6715_s9   ;;  %p5886_p0 = scmp.ge.s32.totalorder %s6715_s9, 1  ;;  %s6715_s9 = sphi %s6736_s9, %s12_s9  }
   0x2   : > { %p113_p1 = scmp.lt.s32.totalorder %s6715_s9, 3 }
   0x4   : > { %p114_p2 = pnand %p5886_p0, %p113_p1 }
   0x6   : > { %117 = sbr.rel (%p114_p2) target bundleno = 1256 (0x4e8), region = 28 }
   0xd   : > { %v179_v0 = vld [vmem:[%s7886_s1] sm:$0xff]  ;;  %v180_v1 = vld [vmem:[%s7886_s1 + $0x8] sm:$0xff]  ;;  %v181_v2 = vld [vmem:[%s7886_s1 + $0x10] sm:$0xff]  ;;  %s5887_s17 = sshll.u32 %s5882_s10, 5  ;;  %vm183_vm0 = vcmask 261120   ;;  %v7888_v38 = vmov 0.0  }
   0xe   : > { %v6561_v3 = vpack.c.bf16 %v180_v1, %v179_v0  ;;  %v182_v4 = vld [vmem:[%s7886_s1 + $0x18] sm:$0xff]  ;;  %p136_p3 = scmp.lt.s32.totalorder %s5887_s17, 63  ;;  %6241 = vmatprep.subr.mxu1 %v7888_v38  ;;  %vm6718_vm1 = vmmov 0   ;;  %s6719_s24 = smov 112   ;;  %vm508_vm2 = vcmask 130048   ;;  %vm3009_vm4 = vcmask 64512  }
   0xf   : > { %v6565_v5 = vpack.c.bf16 %v182_v4, %v181_v2  ;;  %6243 = vmatprep.mubr.msk.f32.mxu1 %vm6718_vm1, %v7888_v38  ;;  %s6720_s25 = smov 96  }
  0x10   : > { %6562 = vmatprep.subr.bf16.mxu0 %v6561_v3  ;;  %s7917_s17 = smov (!%p136_p3, %s5887_s17), 63 }
  0x11   : > { %6564 = vmatpush3.bf16.msra.mxu0 %v6561_v3  ;;  %s5888_s20 = sshll.u32 %s7917_s17, 3 }
  0x12   : > { %6566 = vmatprep.subr.bf16.mxu0 %v6565_v5  ;;  %s6764_s23 = scalar_lea.vmem %s7885_s0, %s5888_s20  ;;  %s7816_s28 = scalar_lea.vmem %s7887_s2, %s5888_s20 }
  0x13   : > { %v147_v6 = vld [vmem:[%s6764_s23] sm:$0xff]  ;;  %v148_v7 = vld [vmem:[%s6764_s23 + $0x8] sm:$0xff]  ;;  %v149_v8 = vld [vmem:[%s6764_s23 + $0x10] sm:$0xff] }
  0x14   : > { %6193 = vmatprep.mubr.msk.f32.mxu0 %vm183_vm0, %v147_v6  ;;  %v150_v9 = vld [vmem:[%s6764_s23 + $0x18] sm:$0xff]  ;;  %v151_v10 = vld [vmem:[%s6764_s23 + $0x20] sm:$0xff]  ;;  %v152_v11 = vld [vmem:[%s6764_s23 + $0x28] sm:$0xff] }
  0x15   : > { %6568 = vmatpush3.bf16.msra.mxu0 %v6565_v5  ;;  %v153_v12 = vld [vmem:[%s6764_s23 + $0x30] sm:$0xff]  ;;  %v154_v13 = vld [vmem:[%s6764_s23 + $0x38] sm:$0xff]  ;;  %v155_v14 = vld [vmem:[%s6764_s23 + $0x40] sm:$0xff] }
  0x16   : > { %v156_v15 = vld [vmem:[%s6764_s23 + $0x48] sm:$0xff]  ;;  %v157_v16 = vld [vmem:[%s6764_s23 + $0x50] sm:$0xff]  ;;  %v158_v17 = vld [vmem:[%s6764_s23 + $0x58] sm:$0xff]  ;;  %6326 = vmatprep.subr.mxu0 %v7888_v38 }
  0x17   : > { %v159_v18 = vld [vmem:[%s6764_s23 + $0x60] sm:$0xff]  ;;  %v160_v19 = vld [vmem:[%s6764_s23 + $0x68] sm:$0xff]  ;;  %v161_v20 = vld [vmem:[%s6764_s23 + $0x70] sm:$0xff] }
  0x18   : > { %6194 = vmatmul.mubr.msk.f32.vlgmr.msra.gmra.mrb[0].mxu0 %vm183_vm0, %v148_v7  ;;  %v162_v21 = vld [vmem:[%s6764_s23 + $0x78] sm:$0xff]  ;;  %v163_v22 = vld [vmem:[%s6764_s23 + $0x80] sm:$0xff]  ;;  %v164_v23 = vld [vmem:[%s6764_s23 + $0x88] sm:$0xff] }
  0x19   : > { %6196 = vmatprep.mubr.msk.f32.mxu0 %vm183_vm0, %v149_v8  ;;  %v165_v24 = vld [vmem:[%s6764_s23 + $0x90] sm:$0xff]  ;;  %v166_v25 = vld [vmem:[%s6764_s23 + $0x98] sm:$0xff]  ;;  %v167_v26 = vld [vmem:[%s6764_s23 + $0xa0] sm:$0xff] }
  0x1a   : > { %v168_v27 = vld [vmem:[%s6764_s23 + $0xa8] sm:$0xff]  ;;  %v169_v28 = vld [vmem:[%s6764_s23 + $0xb0] sm:$0xff]  ;;  %v170_v29 = vld [vmem:[%s6764_s23 + $0xb8] sm:$0xff] }
  0x1b   : > { %v171_v30 = vld [vmem:[%s6764_s23 + $0xc0] sm:$0xff]  ;;  %v172_v31 = vld [vmem:[%s6764_s23 + $0xc8] sm:$0xff]  ;;  %v173_v32 = vld [vmem:[%s6764_s23 + $0xd0] sm:$0xff] }
  0x1c   : > { %6197 = vmatmul.mubr.msk.f32.gmra.mrb[2].mxu0 %vm183_vm0, %v150_v9  ;;  %v174_v33 = vld [vmem:[%s6764_s23 + $0xd8] sm:$0xff]  ;;  %v175_v34 = vld [vmem:[%s6764_s23 + $0xe0] sm:$0xff]  ;;  %v176_v35 = vld [vmem:[%s6764_s23 + $0xe8] sm:$0xff] }
  0x1d   : > { %6199 = vmatprep.mubr.msk.f32.mxu0 %vm183_vm0, %v151_v10  ;;  %v177_v36 = vld [vmem:[%s6764_s23 + $0xf0] sm:$0xff]  ;;  %v178_v37 = vld [vmem:[%s6764_s23 + $0xf8] sm:$0xff] }
  0x20   : > { %6200 = vmatmul.mubr.msk.f32.gmra.mrb[4].mxu0 %vm183_vm0, %v152_v11 }
  0x21   : > { %6202 = vmatprep.mubr.msk.f32.mxu0 %vm183_vm0, %v153_v12 }
  0x24   : > { %6203 = vmatmul.mubr.msk.f32.gmra.mrb[6].mxu0 %vm183_vm0, %v154_v13 }
  0x25   : > { %6205 = vmatprep.mubr.msk.f32.mxu0 %vm183_vm0, %v155_v14 }
  0x28   : > { %6206 = vmatmul.mubr.msk.f32.gmra.mrb[8].mxu0 %vm183_vm0, %v156_v15 }
  0x29   : > { %6208 = vmatprep.mubr.msk.f32.mxu0 %vm183_vm0, %v157_v16 }
  0x2c   : > { %6209 = vmatmul.mubr.msk.f32.gmra.mrb[10].mxu0 %vm183_vm0, %v158_v17 }
  0x2d   : > { %6211 = vmatprep.mubr.msk.f32.mxu0 %vm183_vm0, %v159_v18 }
  0x30   : > { %6212 = vmatmul.mubr.msk.f32.gmra.mrb[12].mxu0 %vm183_vm0, %v160_v19 }
  0x31   : > { %6214 = vmatprep.mubr.msk.f32.mxu0 %vm183_vm0, %v161_v20 }
  0x34   : > { %6215 = vmatmul.mubr.msk.f32.gmra.mrb[14].mxu0 %vm183_vm0, %v162_v21 }
  0x35   : > { %6217 = vmatprep.mubr.msk.f32.mxu0 %vm183_vm0, %v163_v22 }
  0x38   : > { %6218 = vmatmul.mubr.msk.f32.gmra.mrb[16].mxu0 %vm183_vm0, %v164_v23 }
  0x39   : > { %6220 = vmatprep.mubr.msk.f32.mxu0 %vm183_vm0, %v165_v24 }
  0x3c   : > { %6221 = vmatmul.mubr.msk.f32.gmra.mrb[18].mxu0 %vm183_vm0, %v166_v25 }
  0x3d   : > { %6223 = vmatprep.mubr.msk.f32.mxu0 %vm183_vm0, %v167_v26 }
  0x40   : > { %6224 = vmatmul.mubr.msk.f32.gmra.mrb[20].mxu0 %vm183_vm0, %v168_v27 }
  0x41   : > { %6226 = vmatprep.mubr.msk.f32.mxu0 %vm183_vm0, %v169_v28 }
  0x44   : > { %6227 = vmatmul.mubr.msk.f32.gmra.mrb[22].mxu0 %vm183_vm0, %v170_v29 }
  0x45   : > { %6229 = vmatprep.mubr.msk.f32.mxu0 %vm183_vm0, %v171_v30 }
  0x48   : > { %6230 = vmatmul.mubr.msk.f32.gmra.mrb[24].mxu0 %vm183_vm0, %v172_v31 }
  0x49   : > { %6232 = vmatprep.mubr.msk.f32.mxu0 %vm183_vm0, %v173_v32 }
  0x4c   : > { %6233 = vmatmul.mubr.msk.f32.gmra.mrb[26].mxu0 %vm183_vm0, %v174_v33 }
  0x4d   : > { %6235 = vmatprep.mubr.msk.f32.mxu0 %vm183_vm0, %v175_v34 }
  0x50   : > { %6236 = vmatmul.mubr.msk.f32.gmra.mrb[28].mxu0 %vm183_vm0, %v176_v35 }
  0x51   : > { %6238 = vmatprep.mubr.msk.f32.mxu0 %vm183_vm0, %v177_v36 }
  0x54   : > { %6239 = vmatmul.mubr.msk.f32.gmra.mrb[30].mxu0 %vm183_vm0, %v178_v37 }
  0x55   : > { %6328 = vmatprep.mubr.msk.f32.mxu0 %vm6718_vm1, %v7888_v38 }
  0xeb   : > { %v6836_v39 = vpop.f32.mrb[0].mxu0 }
  0xec   : > { %v6838_v40 = vpop.f32.mrb[1].mxu0 }
  0xed   : > { %506 = vrot.lane.b32.xlu0 %v6838_v40, %s6719_s24 }
  0xef   : > { %v6842_v41 = vpop.f32.mrb[2].mxu0 }
  0xf0   : > { %v6844_v42 = vpop.f32.mrb[3].mxu0 }
  0xf1   : > { %584 = vrot.lane.b32.xlu0 %v6836_v39, %s6719_s24  ;;  %661 = vrot.lane.b32.xlu1 %v6844_v42, %s6719_s24 }
  0xf3   : > { %v6850_v43 = vpop.f32.mrb[4].mxu0 }
  0xf4   : > { %v6852_v44 = vpop.f32.mrb[5].mxu0 }
  0xf5   : > { %738 = vrot.lane.b32.xlu1 %v6842_v41, %s6719_s24  ;;  %815 = vrot.lane.b32.xlu0 %v6852_v44, %s6719_s24 }
  0xf7   : > { %v6858_v45 = vpop.f32.mrb[6].mxu0 }
  0xf8   : > { %v6860_v46 = vpop.f32.mrb[7].mxu0 }
  0xf9   : > { %892 = vrot.lane.b32.xlu1 %v6850_v43, %s6719_s24  ;;  %969 = vrot.lane.b32.xlu0 %v6860_v46, %s6719_s24 }
  0xfb   : > { %v6866_v47 = vpop.f32.mrb[8].mxu0 }
  0xfc   : > { %v6868_v48 = vpop.f32.mrb[9].mxu0 }
  0xfd   : > { %1046 = vrot.lane.b32.xlu1 %v6858_v45, %s6719_s24  ;;  %1123 = vrot.lane.b32.xlu0 %v6868_v48, %s6719_s24 }
  0xff   : > { %v6874_v49 = vpop.f32.mrb[10].mxu0 }
 0x100   : > { %v6876_v50 = vpop.f32.mrb[11].mxu0 }
 0x101   : > { %1200 = vrot.lane.b32.xlu1 %v6866_v47, %s6719_s24  ;;  %1277 = vrot.lane.b32.xlu0 %v6876_v50, %s6719_s24 }
 0x103   : > { %v6882_v51 = vpop.f32.mrb[12].mxu0 }
 0x104   : > { %v6884_v52 = vpop.f32.mrb[13].mxu0 }
 0x105   : > { %1354 = vrot.lane.b32.xlu1 %v6874_v49, %s6719_s24  ;;  %1431 = vrot.lane.b32.xlu0 %v6884_v52, %s6719_s24 }
 0x107   : > { %v6890_v53 = vpop.f32.mrb[14].mxu0 }
 0x108   : > { %v6892_v54 = vpop.f32.mrb[15].mxu0 }
 0x109   : > { %1508 = vrot.lane.b32.xlu1 %v6882_v51, %s6719_s24  ;;  %1585 = vrot.lane.b32.xlu0 %v6892_v54, %s6719_s24 }
 0x10b   : > { %v6898_v55 = vpop.f32.mrb[16].mxu0 }
 0x10c   : > { %v6900_v56 = vpop.f32.mrb[17].mxu0 }
 0x10d   : > { %1662 = vrot.lane.b32.xlu1 %v6890_v53, %s6719_s24  ;;  %1739 = vrot.lane.b32.xlu0 %v6900_v56, %s6719_s24 }
 0x10f   : > { %v6906_v57 = vpop.f32.mrb[18].mxu0 }
 0x110   : > { %v6908_v58 = vpop.f32.mrb[19].mxu0 }
 0x111   : > { %1816 = vrot.lane.b32.xlu1 %v6898_v55, %s6719_s24  ;;  %1893 = vrot.lane.b32.xlu0 %v6908_v58, %s6719_s24 }
 0x113   : > { %v6914_v59 = vpop.f32.mrb[20].mxu0 }
 0x114   : > { %v6916_v60 = vpop.f32.mrb[21].mxu0 }
 0x115   : > { %1970 = vrot.lane.b32.xlu1 %v6906_v57, %s6719_s24  ;;  %2047 = vrot.lane.b32.xlu0 %v6916_v60, %s6719_s24 }
 0x117   : > { %v6922_v61 = vpop.f32.mrb[22].mxu0 }
 0x118   : > { %v6924_v62 = vpop.f32.mrb[23].mxu0 }
 0x119   : > { %2124 = vrot.lane.b32.xlu1 %v6914_v59, %s6719_s24  ;;  %2201 = vrot.lane.b32.xlu0 %v6924_v62, %s6719_s24 }
 0x11b   : > { %v6930_v63 = vpop.f32.mrb[24].mxu0 }
 0x11c   : > { %v6932_v0 = vpop.f32.mrb[25].mxu0 }
 0x11d   : > { %2278 = vrot.lane.b32.xlu1 %v6922_v61, %s6719_s24  ;;  %2355 = vrot.lane.b32.xlu0 %v6932_v0, %s6719_s24 }
 0x11f   : > { %v6938_v1 = vpop.f32.mrb[26].mxu0 }
 0x120   : > { %v6940_v2 = vpop.f32.mrb[27].mxu0 }
 0x121   : > { %2432 = vrot.lane.b32.xlu1 %v6930_v63, %s6719_s24  ;;  %2509 = vrot.lane.b32.xlu0 %v6940_v2, %s6719_s24 }
 0x123   : > { %v6946_v3 = vpop.f32.mrb[28].mxu0 }
 0x124   : > { %v6948_v4 = vpop.f32.mrb[29].mxu0 }
 0x125   : > { %2586 = vrot.lane.b32.xlu1 %v6938_v1, %s6719_s24  ;;  %2663 = vrot.lane.b32.xlu0 %v6948_v4, %s6719_s24 }
 0x127   : > { %v6954_v5 = vpop.f32.mrb[30].mxu0 }
 0x128   : > { %7891 = vst [vmem:[#allocation2_spill] sm:$0xff] %v6954_v5  ;;  %v6956_v6 = vpop.f32.mrb[31].mxu0 }
 0x129   : > { %2740 = vrot.lane.b32.xlu1 %v6946_v3, %s6719_s24  ;;  %2817 = vrot.lane.b32.xlu0 %v6956_v6, %s6719_s24 }
 0x12d   : > { %2894 = vrot.lane.b32.xlu1 %v6954_v5, %s6719_s24  ;;  %3438 = vrot.lane.b32.xlu0 %v6836_v39, %s6720_s25 }
 0x131   : > { %3362 = vrot.lane.b32.xlu1 %v6838_v40, %s6720_s25  ;;  %3590 = vrot.lane.b32.xlu0 %v6842_v41, %s6720_s25 }
 0x135   : > { %3514 = vrot.lane.b32.xlu1 %v6844_v42, %s6720_s25  ;;  %3742 = vrot.lane.b32.xlu0 %v6850_v43, %s6720_s25 }
 0x139   : > { %3666 = vrot.lane.b32.xlu1 %v6852_v44, %s6720_s25  ;;  %3894 = vrot.lane.b32.xlu0 %v6858_v45, %s6720_s25 }
 0x13d   : > { %3818 = vrot.lane.b32.xlu1 %v6860_v46, %s6720_s25  ;;  %4046 = vrot.lane.b32.xlu0 %v6866_v47, %s6720_s25 }
 0x141   : > { %3970 = vrot.lane.b32.xlu1 %v6868_v48, %s6720_s25  ;;  %4198 = vrot.lane.b32.xlu0 %v6874_v49, %s6720_s25 }
 0x145   : > { %4122 = vrot.lane.b32.xlu1 %v6876_v50, %s6720_s25  ;;  %4350 = vrot.lane.b32.xlu0 %v6882_v51, %s6720_s25 }
 0x149   : > { %4274 = vrot.lane.b32.xlu1 %v6884_v52, %s6720_s25  ;;  %4502 = vrot.lane.b32.xlu0 %v6890_v53, %s6720_s25 }
 0x14d   : > { %4426 = vrot.lane.b32.xlu1 %v6892_v54, %s6720_s25 }
 0x151   : > { %4578 = vrot.lane.b32.xlu1 %v6900_v56, %s6720_s25 }
 0x15f   : > { %v507_v7 = vpop.permute.xlu0 %506 }
 0x160   : > { %6242 = vmatpush3.xpose.msk.msra.mxu1 %vm508_vm2, %v507_v7 }
 0x161   : > { %6246 = vmatprep.subr.mxu1 %v7888_v38 }
 0x163   : > { %6244 = vmatmul.mubr.msk.f32.vlgmr.msra.gmra.mrb[0].mxu1 %vm508_vm2, %v6838_v40  ;;  %v585_v8 = vpop.permute.xlu0 %584  ;;  %v662_v9 = vpop.permute.xlu1 %661 }
 0x164   : > { %6247 = vmatpush3.xpose.msk.msra.mxu1 %vm508_vm2, %v585_v8  ;;  %6248 = vmatprep.mubr.msk.f32.mxu1 %vm6718_vm1, %v7888_v38 }
 0x165   : > { %6251 = vmatprep.subr.mxu1 %v7888_v38 }
 0x167   : > { %6249 = vmatmul.mubr.msk.f32.vlgmr.msra.gmra.mrb[2].mxu1 %vm508_vm2, %v6836_v39  ;;  %v739_v10 = vpop.permute.xlu1 %738  ;;  %v816_v11 = vpop.permute.xlu0 %815 }
 0x168   : > { %6252 = vmatpush3.xpose.msk.msra.mxu1 %vm508_vm2, %v662_v9  ;;  %6253 = vmatprep.mubr.msk.f32.mxu1 %vm6718_vm1, %v7888_v38 }
 0x169   : > { %6256 = vmatprep.subr.mxu1 %v7888_v38 }
 0x16b   : > { %6254 = vmatmul.mubr.msk.f32.vlgmr.msra.gmra.mrb[4].mxu1 %vm508_vm2, %v6844_v42  ;;  %v893_v12 = vpop.permute.xlu1 %892  ;;  %v970_v13 = vpop.permute.xlu0 %969  ;;  %v2970_v42 = vlaneseq }
 0x16c   : > { %6257 = vmatpush3.xpose.msk.msra.mxu1 %vm508_vm2, %v739_v10  ;;  %6258 = vmatprep.mubr.msk.f32.mxu1 %vm6718_vm1, %v7888_v38 }
 0x16d   : > { %6261 = vmatprep.subr.mxu1 %v7888_v38 }
 0x16f   : > { %6259 = vmatmul.mubr.msk.f32.vlgmr.msra.gmra.mrb[6].mxu1 %vm508_vm2, %v6842_v41  ;;  %v1047_v14 = vpop.permute.xlu1 %1046  ;;  %v1124_v15 = vpop.permute.xlu0 %1123 }
 0x170   : > { %6262 = vmatpush3.xpose.msk.msra.mxu1 %vm508_vm2, %v816_v11  ;;  %6263 = vmatprep.mubr.msk.f32.mxu1 %vm6718_vm1, %v7888_v38 }
 0x171   : > { %6266 = vmatprep.subr.mxu1 %v7888_v38 }
 0x173   : > { %6264 = vmatmul.mubr.msk.f32.vlgmr.msra.gmra.mrb[8].mxu1 %vm508_vm2, %v6852_v44  ;;  %v1201_v16 = vpop.permute.xlu1 %1200  ;;  %v1278_v17 = vpop.permute.xlu0 %1277  ;;  %v2973_v44 = vand.u32 127, %v2970_v42 }
 0x174   : > { %6267 = vmatpush3.xpose.msk.msra.mxu1 %vm508_vm2, %v893_v12  ;;  %6268 = vmatprep.mubr.msk.f32.mxu1 %vm6718_vm1, %v7888_v38 }
 0x175   : > { %6271 = vmatprep.subr.mxu1 %v7888_v38 }
 0x177   : > { %6269 = vmatmul.mubr.msk.f32.vlgmr.msra.gmra.mrb[10].mxu1 %vm508_vm2, %v6850_v43  ;;  %v1355_v18 = vpop.permute.xlu1 %1354  ;;  %v1432_v19 = vpop.permute.xlu0 %1431  ;;  %v2971_v43 = vshrl.u32 %v2970_v42, 7 }
 0x178   : > { %6272 = vmatpush3.xpose.msk.msra.mxu1 %vm508_vm2, %v970_v13  ;;  %6273 = vmatprep.mubr.msk.f32.mxu1 %vm6718_vm1, %v7888_v38 }
 0x179   : > { %6276 = vmatprep.subr.mxu1 %v7888_v38  ;;  %vm7210_vm3 = vcmp.ge.s32.totalorder %v2971_v43, %v2973_v44 }
 0x17b   : > { %6274 = vmatmul.mubr.msk.f32.vlgmr.msra.gmra.mrb[12].mxu1 %vm508_vm2, %v6860_v46  ;;  %v1509_v20 = vpop.permute.xlu1 %1508  ;;  %v1586_v21 = vpop.permute.xlu0 %1585 }
 0x17c   : > { %6277 = vmatpush3.xpose.msk.msra.mxu1 %vm508_vm2, %v1047_v14  ;;  %6278 = vmatprep.mubr.msk.f32.mxu1 %vm6718_vm1, %v7888_v38 }
 0x17d   : > { %6281 = vmatprep.subr.mxu1 %v7888_v38 }
 0x17f   : > { %6279 = vmatmul.mubr.msk.f32.vlgmr.msra.gmra.mrb[14].mxu1 %vm508_vm2, %v6858_v45  ;;  %v7044_v22 = vpop.permute.xlu1 %1662  ;;  %v7046_v23 = vpop.permute.xlu0 %1739 }
 0x180   : > { %6282 = vmatpush3.xpose.msk.msra.mxu1 %vm508_vm2, %v1124_v15  ;;  %6283 = vmatprep.mubr.msk.f32.mxu1 %vm6718_vm1, %v7888_v38 }
 0x181   : > { %6286 = vmatprep.subr.mxu1 %v7888_v38 }
 0x183   : > { %6284 = vmatmul.mubr.msk.f32.vlgmr.msra.gmra.mrb[16].mxu1 %vm508_vm2, %v6868_v48  ;;  %v1817_v24 = vpop.permute.xlu1 %1816  ;;  %v7054_v25 = vpop.permute.xlu0 %1893 }
 0x184   : > { %6287 = vmatpush3.xpose.msk.msra.mxu1 %vm508_vm2, %v1201_v16  ;;  %6327 = vmatpush3.xpose.msk.msra.mxu0 %vm508_vm2, %v1817_v24 }
 0x185   : > { %6288 = vmatprep.mubr.msk.f32.mxu1 %vm6718_vm1, %v7888_v38  ;;  %6291 = vmatprep.subr.mxu1 %v7888_v38 }
 0x186   : > { %6336 = vmatprep.subr.mxu0 %v7888_v38 }
 0x187   : > { %6289 = vmatmul.mubr.msk.f32.vlgmr.msra.gmra.mrb[18].mxu1 %vm508_vm2, %v6866_v47  ;;  %6329 = vmatmul.mubr.msk.f32.vlgmr.msra.gmra.mrb[32].mxu0 %vm508_vm2, %v6898_v55  ;;  %v1971_v26 = vpop.permute.xlu1 %1970  ;;  %v7066_v27 = vpop.permute.xlu0 %2047 }
 0x188   : > { %6292 = vmatpush3.xpose.msk.msra.mxu1 %vm508_vm2, %v1278_v17  ;;  %6337 = vmatpush3.xpose.msk.msra.mxu0 %vm508_vm2, %v1971_v26 }
 0x189   : > { %6293 = vmatprep.mubr.msk.f32.mxu1 %vm6718_vm1, %v7888_v38  ;;  %6338 = vmatprep.mubr.msk.f32.mxu0 %vm6718_vm1, %v7888_v38 }
 0x18a   : > { %6296 = vmatprep.subr.mxu1 %v7888_v38  ;;  %6346 = vmatprep.subr.mxu0 %v7888_v38 }
 0x18b   : > { %6294 = vmatmul.mubr.msk.f32.vlgmr.msra.gmra.mrb[20].mxu1 %vm508_vm2, %v6876_v50  ;;  %6339 = vmatmul.mubr.msk.f32.vlgmr.msra.gmra.mrb[34].mxu0 %vm508_vm2, %v6906_v57  ;;  %v2125_v28 = vpop.permute.xlu1 %2124  ;;  %v7080_v29 = vpop.permute.xlu0 %2201 }
 0x18c   : > { %6297 = vmatpush3.xpose.msk.msra.mxu1 %vm508_vm2, %v1355_v18  ;;  %6347 = vmatpush3.xpose.msk.msra.mxu0 %vm508_vm2, %v2125_v28 }
 0x18d   : > { %6298 = vmatprep.mubr.msk.f32.mxu1 %vm6718_vm1, %v7888_v38  ;;  %6348 = vmatprep.mubr.msk.f32.mxu0 %vm6718_vm1, %v7888_v38 }
 0x18e   : > { %6301 = vmatprep.subr.mxu1 %v7888_v38  ;;  %6356 = vmatprep.subr.mxu0 %v7888_v38 }
 0x18f   : > { %6299 = vmatmul.mubr.msk.f32.vlgmr.msra.gmra.mrb[22].mxu1 %vm508_vm2, %v6874_v49  ;;  %6349 = vmatmul.mubr.msk.f32.vlgmr.msra.gmra.mrb[36].mxu0 %vm508_vm2, %v6914_v59  ;;  %v2279_v30 = vpop.permute.xlu1 %2278  ;;  %v7094_v31 = vpop.permute.xlu0 %2355 }
 0x190   : > { %6302 = vmatpush3.xpose.msk.msra.mxu1 %vm508_vm2, %v1432_v19  ;;  %6357 = vmatpush3.xpose.msk.msra.mxu0 %vm508_vm2, %v2279_v30 }
 0x191   : > { %6303 = vmatprep.mubr.msk.f32.mxu1 %vm6718_vm1, %v7888_v38  ;;  %6358 = vmatprep.mubr.msk.f32.mxu0 %vm6718_vm1, %v7888_v38 }
 0x192   : > { %6306 = vmatprep.subr.mxu1 %v7888_v38  ;;  %6366 = vmatprep.subr.mxu0 %v7888_v38 }
 0x193   : > { %6304 = vmatmul.mubr.msk.f32.vlgmr.msra.gmra.mrb[24].mxu1 %vm508_vm2, %v6884_v52  ;;  %6359 = vmatmul.mubr.msk.f32.vlgmr.msra.gmra.mrb[38].mxu0 %vm508_vm2, %v6922_v61  ;;  %v2433_v32 = vpop.permute.xlu1 %2432  ;;  %v2510_v33 = vpop.permute.xlu0 %2509 }
 0x194   : > { %6307 = vmatpush3.xpose.msk.msra.mxu1 %vm508_vm2, %v1509_v20  ;;  %6367 = vmatpush3.xpose.msk.msra.mxu0 %vm508_vm2, %v2433_v32 }
 0x195   : > { %6308 = vmatprep.mubr.msk.f32.mxu1 %vm6718_vm1, %v7888_v38  ;;  %6368 = vmatprep.mubr.msk.f32.mxu0 %vm6718_vm1, %v7888_v38 }
 0x196   : > { %6311 = vmatprep.subr.mxu1 %v7888_v38  ;;  %6376 = vmatprep.subr.mxu0 %v7888_v38 }
 0x197   : > { %6309 = vmatmul.mubr.msk.f32.vlgmr.msra.gmra.mrb[26].mxu1 %vm508_vm2, %v6882_v51  ;;  %6369 = vmatmul.mubr.msk.f32.vlgmr.msra.gmra.mrb[40].mxu0 %vm508_vm2, %v6930_v63  ;;  %v2587_v34 = vpop.permute.xlu1 %2586  ;;  %v2664_v35 = vpop.permute.xlu0 %2663 }
 0x198   : > { %6312 = vmatpush3.xpose.msk.msra.mxu1 %vm508_vm2, %v1586_v21  ;;  %6377 = vmatpush3.xpose.msk.msra.mxu0 %vm508_vm2, %v2587_v34 }
 0x199   : > { %6313 = vmatprep.mubr.msk.f32.mxu1 %vm6718_vm1, %v7888_v38  ;;  %6378 = vmatprep.mubr.msk.f32.mxu0 %vm6718_vm1, %v7888_v38 }
 0x19a   : > { %6316 = vmatprep.subr.mxu1 %v7888_v38  ;;  %6386 = vmatprep.subr.mxu0 %v7888_v38 }
 0x19b   : > { %6314 = vmatmul.mubr.msk.f32.vlgmr.msra.gmra.mrb[28].mxu1 %vm508_vm2, %v6892_v54  ;;  %6379 = vmatmul.mubr.msk.f32.vlgmr.msra.gmra.mrb[42].mxu0 %vm508_vm2, %v6938_v1  ;;  %v2741_v36 = vpop.permute.xlu1 %2740  ;;  %v2818_v37 = vpop.permute.xlu0 %2817 }
 0x19c   : > { %6317 = vmatpush3.xpose.msk.msra.mxu1 %vm508_vm2, %v7044_v22  ;;  %6387 = vmatpush3.xpose.msk.msra.mxu0 %vm508_vm2, %v2741_v36 }
 0x19d   : > { %6318 = vmatprep.mubr.msk.f32.mxu1 %vm6718_vm1, %v7888_v38  ;;  %6388 = vmatprep.mubr.msk.f32.mxu0 %vm6718_vm1, %v7888_v38 }
 0x19e   : > { %6321 = vmatprep.subr.mxu1 %v7888_v38  ;;  %6396 = vmatprep.subr.mxu0 %v7888_v38 }
 0x19f   : > { %6319 = vmatmul.mubr.msk.f32.vlgmr.msra.gmra.mrb[30].mxu1 %vm508_vm2, %v6890_v53  ;;  %6389 = vmatmul.mubr.msk.f32.vlgmr.msra.gmra.mrb[44].mxu0 %vm508_vm2, %v6946_v3  ;;  %v2895_v39 = vpop.permute.xlu1 %2894  ;;  %v3439_v40 = vpop.permute.xlu0 %3438 }
 0x1a0   : > { %6322 = vmatpush3.xpose.msk.msra.mxu1 %vm508_vm2, %v7046_v23  ;;  %6397 = vmatpush3.xpose.msk.msra.mxu0 %vm508_vm2, %v2895_v39 }
 0x1a1   : > { %6323 = vmatprep.mubr.msk.f32.mxu1 %vm6718_vm1, %v7888_v38  ;;  %6398 = vmatprep.mubr.msk.f32.mxu0 %vm6718_vm1, %v7888_v38 }
 0x1a2   : > { %6331 = vmatprep.subr.mxu1 %v7888_v38  ;;  %6406 = vmatprep.subr.mxu0 %v7888_v38 }
 0x1a3   : > { %6324 = vmatmul.mubr.msk.f32.vlgmr.msra.gmra.mrb[32].mxu1 %vm508_vm2, %v6900_v56  ;;  %6399 = vmatmul.mubr.msk.f32.vlgmr.msra.gmra.mrb[46].mxu0 %vm508_vm2, %v6954_v5  ;;  %v3363_v41 = vpop.permute.xlu1 %3362 }
 0x1a4   : > { %6332 = vmatpush3.xpose.msk.msra.mxu1 %vm508_vm2, %v7054_v25  ;;  %6407 = vmatpush3.msra.mxu0 %v3439_v40 }
 0x1a5   : > { %6333 = vmatprep.mubr.msk.f32.mxu1 %vm6718_vm1, %v7888_v38  ;;  %6341 = vmatprep.subr.mxu1 %v7888_v38 }
 0x1a6   : > { %6408 = vmatprep.mubr.msk.f32.mxu0 %vm6718_vm1, %v7888_v38  ;;  %6416 = vmatprep.subr.mxu0 %v7888_v38 }
 0x1a7   : > { %6334 = vmatmul.mubr.msk.f32.vlgmr.msra.gmra.mrb[34].mxu1 %vm508_vm2, %v6908_v58 }
 0x1a8   : > { %6342 = vmatpush3.xpose.msk.msra.mxu1 %vm508_vm2, %v7066_v27  ;;  %6343 = vmatprep.mubr.msk.f32.mxu1 %vm6718_vm1, %v7888_v38 }
 0x1a9   : > { %6351 = vmatprep.subr.mxu1 %v7888_v38 }
 0x1ab   : > { %6344 = vmatmul.mubr.msk.f32.vlgmr.msra.gmra.mrb[36].mxu1 %vm508_vm2, %v6916_v60 }
 0x1ac   : > { %6352 = vmatpush3.xpose.msk.msra.mxu1 %vm508_vm2, %v7080_v29  ;;  %6353 = vmatprep.mubr.msk.f32.mxu1 %vm6718_vm1, %v7888_v38 }
 0x1ad   : > { %6361 = vmatprep.subr.mxu1 %v7888_v38 }
 0x1af   : > { %6354 = vmatmul.mubr.msk.f32.vlgmr.msra.gmra.mrb[38].mxu1 %vm508_vm2, %v6924_v62 }
 0x1b0   : > { %6362 = vmatpush3.xpose.msk.msra.mxu1 %vm508_vm2, %v7094_v31  ;;  %6363 = vmatprep.mubr.msk.f32.mxu1 %vm6718_vm1, %v7888_v38 }
 0x1b1   : > { %6371 = vmatprep.subr.mxu1 %v7888_v38 }
 0x1b3   : > { %6364 = vmatmul.mubr.msk.f32.vlgmr.msra.gmra.mrb[40].mxu1 %vm508_vm2, %v6932_v0 }
 0x1b4   : > { %6372 = vmatpush3.xpose.msk.msra.mxu1 %vm508_vm2, %v2510_v33  ;;  %6373 = vmatprep.mubr.msk.f32.mxu1 %vm6718_vm1, %v7888_v38 }
 0x1b5   : > { %6381 = vmatprep.subr.mxu1 %v7888_v38 }
 0x1b7   : > { %6374 = vmatmul.mubr.msk.f32.vlgmr.msra.gmra.mrb[42].mxu1 %vm508_vm2, %v6940_v2 }
 0x1b8   : > { %6382 = vmatpush3.xpose.msk.msra.mxu1 %vm508_vm2, %v2664_v35  ;;  %6383 = vmatprep.mubr.msk.f32.mxu1 %vm6718_vm1, %v7888_v38 }
 0x1b9   : > { %6391 = vmatprep.subr.mxu1 %v7888_v38 }
 0x1bb   : > { %6384 = vmatmul.mubr.msk.f32.vlgmr.msra.gmra.mrb[44].mxu1 %vm508_vm2, %v6948_v4 }
 0x1bc   : > { %6392 = vmatpush3.xpose.msk.msra.mxu1 %vm508_vm2, %v2818_v37  ;;  %6393 = vmatprep.mubr.msk.f32.mxu1 %vm6718_vm1, %v7888_v38 }
 0x1bd   : > { %6401 = vmatprep.subr.mxu1 %v7888_v38 }
 0x1bf   : > { %6394 = vmatmul.mubr.msk.f32.vlgmr.msra.gmra.mrb[46].mxu1 %vm508_vm2, %v6956_v6 }
 0x1c0   : > { %6402 = vmatpush3.msra.mxu1 %v3363_v41  ;;  %6403 = vmatprep.mubr.msk.f32.mxu1 %vm6718_vm1, %v7888_v38 }
 0x1c1   : > { %6411 = vmatprep.subr.mxu1 %v7888_v38 }
 0x236   : > { %v579_v46 = vpop.f32.mrb[0].mxu1 }
 0x237   : > { %v7216_v47 = vsel %vm7210_vm3, %v579_v46, -inf  ;;  %v6245_v48 = vpop.f32.mrb[1].mxu1 }
 0x238   : > { %v3010_v49 = vsel %vm3009_vm4, %v7216_v47, -inf }
 0x239   : > { %3011 = vmax.xlane.f32.xlu0 %v3010_v49 }
 0x23a   : > { %v656_v50 = vpop.f32.mrb[2].mxu1 }
 0x23b   : > { %v7222_v51 = vsel %vm7210_vm3, %v656_v50, -inf  ;;  %v6250_v52 = vpop.f32.mrb[3].mxu1 }
 0x23c   : > { %v3013_v53 = vsel %vm3009_vm4, %v7222_v51, -inf }
 0x23d   : > { %3014 = vmax.xlane.f32.xlu1 %v3013_v53 }
 0x23e   : > { %v733_v54 = vpop.f32.mrb[4].mxu1 }
 0x23f   : > { %v7228_v56 = vsel %vm7210_vm3, %v733_v54, -inf  ;;  %v6255_v7 = vpop.f32.mrb[5].mxu1 }
 0x240   : > { %v3016_v8 = vsel %vm3009_vm4, %v7228_v56, -inf }
 0x241   : > { %3017 = vmax.xlane.f32.xlu0 %v3016_v8 }
 0x242   : > { %v810_v9 = vpop.f32.mrb[6].mxu1 }
 0x243   : > { %v7234_v10 = vsel %vm7210_vm3, %v810_v9, -inf  ;;  %v6260_v11 = vpop.f32.mrb[7].mxu1 }
 0x244   : > { %v3019_v12 = vsel %vm3009_vm4, %v7234_v10, -inf }
 0x245   : > { %3020 = vmax.xlane.f32.xlu0 %v3019_v12 }
 0x246   : > { %v887_v13 = vpop.f32.mrb[8].mxu1 }
 0x247   : > { %v7240_v14 = vsel %vm7210_vm3, %v887_v13, -inf  ;;  %v6265_v15 = vpop.f32.mrb[9].mxu1 }
 0x248   : > { %v3022_v16 = vsel %vm3009_vm4, %v7240_v14, -inf }
 0x249   : > { %3023 = vmax.xlane.f32.xlu1 %v3022_v16 }
 0x24a   : > { %v964_v17 = vpop.f32.mrb[10].mxu1 }
 0x24b   : > { %v7246_v18 = vsel %vm7210_vm3, %v964_v17, -inf  ;;  %v6270_v19 = vpop.f32.mrb[11].mxu1 }
 0x24c   : > { %v3025_v20 = vsel %vm3009_vm4, %v7246_v18, -inf }
 0x24d   : > { %3026 = vmax.xlane.f32.xlu0 %v3025_v20 }
 0x24e   : > { %v1041_v21 = vpop.f32.mrb[12].mxu1 }
 0x24f   : > { %v7252_v22 = vsel %vm7210_vm3, %v1041_v21, -inf  ;;  %v6275_v23 = vpop.f32.mrb[13].mxu1 }
 0x250   : > { %v3028_v24 = vsel %vm3009_vm4, %v7252_v22, -inf }
 0x251   : > { %3029 = vmax.xlane.f32.xlu1 %v3028_v24 }
 0x252   : > { %v1118_v25 = vpop.f32.mrb[14].mxu1 }
 0x253   : > { %v7258_v26 = vsel %vm7210_vm3, %v1118_v25, -inf  ;;  %v6280_v27 = vpop.f32.mrb[15].mxu1 }
 0x254   : > { %v3031_v28 = vsel %vm3009_vm4, %v7258_v26, -inf }
 0x255   : > { %3032 = vmax.xlane.f32.xlu0 %v3031_v28 }
 0x256   : > { %v1195_v29 = vpop.f32.mrb[16].mxu1 }
 0x257   : > { %v7264_v30 = vsel %vm7210_vm3, %v1195_v29, -inf  ;;  %v6285_v31 = vpop.f32.mrb[17].mxu1 }
 0x258   : > { %v3034_v32 = vsel %vm3009_vm4, %v7264_v30, -inf }
 0x259   : > { %3035 = vmax.xlane.f32.xlu1 %v3034_v32 }
 0x25a   : > { %v1272_v33 = vpop.f32.mrb[18].mxu1  ;;  %v1888_v34 = vpop.f32.mrb[32].mxu0 }
 0x25b   : > { %v7270_v35 = vsel %vm7210_vm3, %v1888_v34, -inf  ;;  %v6290_v36 = vpop.f32.mrb[19].mxu1  ;;  %v6330_v37 = vpop.f32.mrb[33].mxu0  ;;  %v7288_v50 = vsel %vm7210_vm3, %v1272_v33, -inf }
 0x25c   : > { %v3061_v39 = vsel %vm3009_vm4, %v7270_v35, -inf  ;;  %v3037_v8 = vsel %vm3009_vm4, %v7288_v50, -inf }
 0x25d   : > { %3062 = vmax.xlane.f32.xlu0 %v3061_v39 }
 0x25e   : > { %v1349_v40 = vpop.f32.mrb[20].mxu1  ;;  %v2042_v41 = vpop.f32.mrb[34].mxu0 }
 0x25f   : > { %v7276_v42 = vsel %vm7210_vm3, %v1349_v40, -inf  ;;  %v7280_v43 = vsel %vm7210_vm3, %v2042_v41, -inf  ;;  %v6295_v44 = vpop.f32.mrb[21].mxu1  ;;  %v6340_v46 = vpop.f32.mrb[35].mxu0 }
 0x260   : > { %v3040_v48 = vsel %vm3009_vm4, %v7276_v42, -inf  ;;  %v3067_v49 = vsel %vm3009_vm4, %v7280_v43, -inf }
 0x261   : > { %3041 = vmax.xlane.f32.xlu1 %v3040_v48  ;;  %3068 = vmax.xlane.f32.xlu0 %v3067_v49 }
 0x262   : > { %v1426_v52 = vpop.f32.mrb[22].mxu1  ;;  %v2196_v53 = vpop.f32.mrb[36].mxu0 }
 0x263   : > { %v6300_v54 = vpop.f32.mrb[23].mxu1  ;;  %v6350_v7 = vpop.f32.mrb[37].mxu0  ;;  %v7294_v9 = vsel %vm7210_vm3, %v2196_v53, -inf  ;;  %v7312_v28 = vsel %vm7210_vm3, %v1426_v52, -inf }
 0x264   : > { %v3073_v19 = vsel %vm3009_vm4, %v7294_v9, -inf  ;;  %v3043_v37 = vsel %vm3009_vm4, %v7312_v28, -inf }
 0x265   : > { %3038 = vmax.xlane.f32.xlu0 %v3037_v8 }
 0x266   : > { %v1503_v11 = vpop.f32.mrb[24].mxu1  ;;  %v2350_v12 = vpop.f32.mrb[38].mxu0 }
 0x267   : > { %v7298_v13 = vsel %vm7210_vm3, %v1503_v11, -inf  ;;  %v6305_v15 = vpop.f32.mrb[25].mxu1  ;;  %v6360_v16 = vpop.f32.mrb[39].mxu0  ;;  %v7306_v20 = vsel %vm7210_vm3, %v2350_v12, -inf }
 0x268   : > { %v3046_v17 = vsel %vm3009_vm4, %v7298_v13, -inf  ;;  %v3079_v27 = vsel %vm3009_vm4, %v7306_v20, -inf }
 0x269   : > { %3047 = vmax.xlane.f32.xlu1 %v3046_v17  ;;  %3074 = vmax.xlane.f32.xlu0 %v3073_v19 }
 0x26a   : > { %v1580_v21 = vpop.f32.mrb[26].mxu1  ;;  %v2504_v23 = vpop.f32.mrb[40].mxu0 }
 0x26b   : > { %v6310_v24 = vpop.f32.mrb[27].mxu1  ;;  %v6370_v25 = vpop.f32.mrb[41].mxu0  ;;  %v7324_v39 = vsel %vm7210_vm3, %v2504_v23, -inf  ;;  %v7342_v15 = vsel %vm7210_vm3, %v1580_v21, -inf }
 0x26c   : > { %v3085_v48 = vsel %vm3009_vm4, %v7324_v39, -inf  ;;  %v3049_v24 = vsel %vm3009_vm4, %v7342_v15, -inf }
 0x26d   : > { %3080 = vmax.xlane.f32.xlu0 %v3079_v27 }
 0x26e   : > { %v1657_v29 = vpop.f32.mrb[28].mxu1  ;;  %v2658_v31 = vpop.f32.mrb[42].mxu0 }
 0x26f   : > { %v7316_v32 = vsel %vm7210_vm3, %v1657_v29, -inf  ;;  %v6315_v33 = vpop.f32.mrb[29].mxu1  ;;  %v6380_v34 = vpop.f32.mrb[43].mxu0  ;;  %v7330_v49 = vsel %vm7210_vm3, %v2658_v31, -inf }
 0x270   : > { %v3052_v36 = vsel %vm3009_vm4, %v7316_v32, -inf  ;;  %v3091_v12 = vsel %vm3009_vm4, %v7330_v49, -inf }
 0x271   : > { %3053 = vmax.xlane.f32.xlu1 %v3052_v36  ;;  %3044 = vmax.xlane.f32.xlu0 %v3043_v37 }
 0x272   : > { %v1734_v40 = vpop.f32.mrb[30].mxu1  ;;  %v2812_v41 = vpop.f32.mrb[44].mxu0 }
 0x273   : > { %v6320_v44 = vpop.f32.mrb[31].mxu1  ;;  %v6390_v46 = vpop.f32.mrb[45].mxu0  ;;  %v7354_v25 = vsel %vm7210_vm3, %v2812_v41, -inf }
 0x274   : > { %v3097_v33 = vsel %vm3009_vm4, %v7354_v25, -inf }
 0x275   : > { %3086 = vmax.xlane.f32.xlu0 %v3085_v48  ;;  %v7378_v48 = vsel %vm7210_vm3, %v1734_v40, -inf }
 0x276   : > { %v1811_v52 = vpop.f32.mrb[32].mxu1  ;;  %v2966_v53 = vpop.f32.mrb[46].mxu0 }
 0x277   : > { %v7334_v54 = vsel %vm7210_vm3, %v1811_v52, -inf  ;;  %v6325_v7 = vpop.f32.mrb[33].mxu1  ;;  %v6400_v8 = vpop.f32.mrb[47].mxu0  ;;  %v7366_v34 = vsel %vm7210_vm3, %v2966_v53, -inf }
 0x278   : > { %v3058_v11 = vsel %vm3009_vm4, %v7334_v54, -inf  ;;  %v3103_v46 = vsel %vm3009_vm4, %v7366_v34, -inf }
 0x279   : > { %3059 = vmax.xlane.f32.xlu1 %v3058_v11  ;;  %3092 = vmax.xlane.f32.xlu0 %v3091_v12  ;;  %v3055_v11 = vsel %vm3009_vm4, %v7378_v48, -inf }
 0x27a   : > { %v1965_v16 = vpop.f32.mrb[34].mxu1 }
 0x27b   : > { %v7346_v17 = vsel %vm7210_vm3, %v1965_v16, -inf  ;;  %v6335_v19 = vpop.f32.mrb[35].mxu1 }
 0x27c   : > { %v3064_v23 = vsel %vm3009_vm4, %v7346_v17, -inf }
 0x27d   : > { %3065 = vmax.xlane.f32.xlu1 %v3064_v23  ;;  %3050 = vmax.xlane.f32.xlu0 %v3049_v24 }
 0x27e   : > { %v2119_v21 = vpop.f32.mrb[36].mxu1 }
 0x27f   : > { %v7358_v27 = vsel %vm7210_vm3, %v2119_v21, -inf  ;;  %v6345_v29 = vpop.f32.mrb[37].mxu1 }
 0x280   : > { %v3070_v31 = vsel %vm3009_vm4, %v7358_v27, -inf }
 0x281   : > { %3071 = vmax.xlane.f32.xlu1 %v3070_v31  ;;  %3098 = vmax.xlane.f32.xlu0 %v3097_v33 }
 0x282   : > { %v2273_v36 = vpop.f32.mrb[38].mxu1 }
 0x283   : > { %v7370_v37 = vsel %vm7210_vm3, %v2273_v36, -inf  ;;  %v6355_v41 = vpop.f32.mrb[39].mxu1 }
 0x284   : > { %v3076_v44 = vsel %vm3009_vm4, %v7370_v37, -inf }
 0x285   : > { %3077 = vmax.xlane.f32.xlu1 %v3076_v44  ;;  %3104 = vmax.xlane.f32.xlu0 %v3103_v46  ;;  %v7406_v44 = vpop.permute.xlu1 %3514  ;;  %v7408_v46 = vpop.permute.xlu0 %3590 }
 0x286   : > { %v2427_v52 = vpop.f32.mrb[40].mxu1 }
 0x287   : > { %v7382_v53 = vsel %vm7210_vm3, %v2427_v52, -inf  ;;  %v6365_v7 = vpop.f32.mrb[41].mxu1 }
 0x288   : > { %v3082_v8 = vsel %vm3009_vm4, %v7382_v53, -inf }
 0x289   : > { %3083 = vmax.xlane.f32.xlu1 %v3082_v8  ;;  %3056 = vmax.xlane.f32.xlu0 %v3055_v11  ;;  %v7412_v52 = vpop.permute.xlu1 %3666  ;;  %v7414_v7 = vpop.permute.xlu0 %3742 }
 0x28a   : > { %v2581_v12 = vpop.f32.mrb[42].mxu1 }
 0x28b   : > { %v7390_v40 = vsel %vm7210_vm3, %v2581_v12, -inf  ;;  %v6375_v16 = vpop.f32.mrb[43].mxu1 }
 0x28c   : > { %v3088_v19 = vsel %vm3009_vm4, %v7390_v40, -inf }
 0x28d   : > { %3089 = vmax.xlane.f32.xlu1 %v3088_v19  ;;  %v7416_v8 = vpop.permute.xlu1 %3818  ;;  %v7418_v45 = vpop.permute.xlu0 %3894 }
 0x28e   : > { %v2735_v23 = vpop.f32.mrb[44].mxu1  ;;  %7894 = vst [vmem:[#allocation3_spill] sm:$0xff] %v7418_v45 }
 0x28f   : > { %v7396_v24 = vsel %vm7210_vm3, %v2735_v23, -inf  ;;  %v6385_v21 = vpop.f32.mrb[45].mxu1 }
 0x290   : > { %v3094_v29 = vsel %vm3009_vm4, %v7396_v24, -inf }
 0x291   : > { %3095 = vmax.xlane.f32.xlu1 %v3094_v29  ;;  %v7420_v11 = vpop.permute.xlu1 %3970  ;;  %v7422_v12 = vpop.permute.xlu0 %4046 }
 0x292   : > { %v2889_v31 = vpop.f32.mrb[46].mxu1  ;;  %7895 = vst [vmem:[#allocation4_spill] sm:$0xff] %v7420_v11  ;;  %7896 = vst [vmem:[#allocation5_spill] sm:$0xff] %v7422_v12 }
 0x293   : > { %v7402_v33 = vsel %vm7210_vm3, %v2889_v31, -inf  ;;  %v6395_v36 = vpop.f32.mrb[47].mxu1 }
 0x294   : > { %v3100_v41 = vsel %vm3009_vm4, %v7402_v33, -inf }
 0x295   : > { %3101 = vmax.xlane.f32.xlu1 %v3100_v41  ;;  %v7424_v16 = vpop.permute.xlu1 %4122  ;;  %v7426_v19 = vpop.permute.xlu0 %4198 }
 0x296   : > { %7897 = vst [vmem:[#allocation6_spill] sm:$0xff] %v7424_v16  ;;  %7898 = vst [vmem:[#allocation7_spill] sm:$0xff] %v7426_v19 }
 0x299   : > { %v7428_v23 = vpop.permute.xlu1 %4274  ;;  %v7430_v21 = vpop.permute.xlu0 %4350 }
 0x29a   : > { %7899 = vst [vmem:[#allocation8_spill] sm:$0xff] %v7428_v23  ;;  %7900 = vst [vmem:[#allocation9_spill] sm:$0xff] %v7430_v21 }
 0x29d   : > { %v7434_v29 = vpop.permute.xlu0 %4502 }
 0x29e   : > { %7902 = vst [vmem:[#allocation11_spill] sm:$0xff] %v7434_v29 }
 0x29f   : > { %4654 = vrot.lane.b32.xlu0 %v6898_v55, %s6720_s25  ;;  %v7432_v55 = vpop.permute.xlu1 %4426 }
 0x2a0   : > { %7901 = vst [vmem:[#allocation10_spill] sm:$0xff] %v7432_v55 }
 0x2a3   : > { %v7436_v31 = vpop.permute.xlu1 %4578 }
 0x2a4   : > { %7903 = vst [vmem:[#allocation12_spill] sm:$0xff] %v7436_v31 }
 0x2c6   : > { %v3012_v36 = vpop.xlane.xlu0 %3011 }
 0x2c7   : > { %v3106_v41 = vsub.f32 %v7216_v47, %v3012_v36 }
 0x2c9   : > { %v3138_v38 = vmul.f32 1.442695, %v3106_v41 }
 0x2ca   : > { %v3015_v11 = vpop.xlane.xlu1 %3014 }
 0x2cb   : > { %6581 = vpow2.f32 %v3138_v38  ;;  %v3107_v16 = vsub.f32 %v7222_v51, %v3015_v11 }
 0x2cd   : > { %v3140_v12 = vmul.f32 1.442695, %v3107_v16 }
 0x2ce   : > { %v3018_v19 = vpop.xlane.xlu0 %3017 }
 0x2cf   : > { %6583 = vpow2.f32 %v3140_v12  ;;  %v3108_v23 = vsub.f32 %v7228_v56, %v3018_v19 }
 0x2d1   : > { %v3142_v21 = vmul.f32 1.442695, %v3108_v23 }
 0x2d2   : > { %v3021_v5 = vpop.xlane.xlu0 %3020 }
 0x2d3   : > { %6585 = vpow2.f32 %v3142_v21  ;;  %v3109_v29 = vsub.f32 %v7234_v10, %v3021_v5 }
 0x2d5   : > { %v7442_v55 = vpop.eup %6581  ;;  %v3144_v31 = vmul.f32 1.442695, %v3109_v29 }
 0x2d6   : > { %v3024_v45 = vpop.xlane.xlu1 %3023  ;;  %v3202_v47 = vsel %vm3009_vm4, %v7442_v55, 0.0 }
 0x2d7   : > { %6587 = vpow2.f32 %v3144_v31  ;;  %v3110_v38 = vsub.f32 %v7240_v14, %v3024_v45  ;;  %3203 = vadd.xlane.f32.xlu1 %v3202_v47 }
 0x2d9   : > { %v7447_v51 = vpop.eup %6583  ;;  %v3146_v11 = vmul.f32 1.442695, %v3110_v38 }
 0x2da   : > { %v3027_v56 = vpop.xlane.xlu0 %3026  ;;  %v3205_v12 = vsel %vm3009_vm4, %v7447_v51, 0.0 }
 0x2db   : > { %6589 = vpow2.f32 %v3146_v11  ;;  %v3111_v5 = vsub.f32 %v7246_v18, %v3027_v56  ;;  %3206 = vadd.xlane.f32.xlu0 %v3205_v12 }
 0x2dd   : > { %v7452_v10 = vpop.eup %6585  ;;  %v3148_v16 = vmul.f32 1.442695, %v3111_v5 }
 0x2de   : > { %v3030_v19 = vpop.xlane.xlu1 %3029  ;;  %v3208_v23 = vsel %vm3009_vm4, %v7452_v10, 0.0 }
 0x2df   : > { %6591 = vpow2.f32 %v3148_v16  ;;  %v3112_v14 = vsub.f32 %v7252_v22, %v3030_v19  ;;  %3209 = vadd.xlane.f32.xlu1 %v3208_v23 }
 0x2e1   : > { %v7457_v45 = vpop.eup %6587  ;;  %v3150_v21 = vmul.f32 1.442695, %v3112_v14 }
 0x2e2   : > { %v3033_v29 = vpop.xlane.xlu0 %3032  ;;  %v3211_v31 = vsel %vm3009_vm4, %v7457_v45, 0.0 }
 0x2e3   : > { %6593 = vpow2.f32 %v3150_v21  ;;  %v3113_v18 = vsub.f32 %v7258_v26, %v3033_v29  ;;  %3212 = vadd.xlane.f32.xlu0 %v3211_v31 }
 0x2e5   : > { %v7462_v36 = vpop.eup %6589  ;;  %v3152_v41 = vmul.f32 1.442695, %v3113_v18 }
 0x2e6   : > { %v3036_v47 = vpop.xlane.xlu1 %3035  ;;  %v3214_v38 = vsel %vm3009_vm4, %v7462_v36, 0.0 }
 0x2e7   : > { %6595 = vpow2.f32 %v3152_v41  ;;  %v3114_v22 = vsub.f32 %v7264_v30, %v3036_v47  ;;  %3215 = vadd.xlane.f32.xlu1 %v3214_v38 }
 0x2e9   : > { %v7467_v11 = vpop.eup %6591  ;;  %v3154_v56 = vmul.f32 1.442695, %v3114_v22 }
 0x2ea   : > { %v3063_v12 = vpop.xlane.xlu0 %3062  ;;  %v3217_v5 = vsel %vm3009_vm4, %v7467_v11, 0.0 }
 0x2eb   : > { %6597 = vpow2.f32 %v3154_v56  ;;  %v3123_v26 = vsub.f32 %v7270_v35, %v3063_v12  ;;  %3218 = vadd.xlane.f32.xlu0 %v3217_v5 }
 0x2ed   : > { %v7472_v16 = vpop.eup %6593  ;;  %v3172_v19 = vmul.f32 1.442695, %v3123_v26 }
 0x2ee   : > { %v3042_v23 = vpop.xlane.xlu1 %3041  ;;  %v3069_v14 = vpop.xlane.xlu0 %3068  ;;  %v3220_v30 = vsel %vm3009_vm4, %v7472_v16, 0.0 }
 0x2ef   : > { %6599 = vpow2.f32 %v3172_v19  ;;  %v3116_v21 = vsub.f32 %v7276_v42, %v3042_v23  ;;  %v3125_v29 = vsub.f32 %v7280_v43, %v3069_v14  ;;  %3221 = vadd.xlane.f32.xlu1 %v3220_v30 }
 0x2f1   : > { %v7478_v31 = vpop.eup %6595  ;;  %v3158_v18 = vmul.f32 1.442695, %v3116_v21  ;;  %v3176_v41 = vmul.f32 1.442695, %v3125_v29 }
 0x2f2   : > { %v3039_v35 = vpop.xlane.xlu0 %3038  ;;  %v3223_v47 = vsel %vm3009_vm4, %v7478_v31, 0.0 }
 0x2f3   : > { %6601 = vpow2.f32 %v3158_v18  ;;  %v3115_v38 = vsub.f32 %v7288_v50, %v3039_v35  ;;  %3224 = vadd.xlane.f32.xlu0 %v3223_v47 }
 0x2f4   : > { %6603 = vpow2.f32 %v3176_v41 }
 0x2f5   : > { %v7483_v22 = vpop.eup %6597  ;;  %v3156_v56 = vmul.f32 1.442695, %v3115_v38 }
 0x2f6   : > { %v3048_v42 = vpop.xlane.xlu1 %3047  ;;  %v3075_v12 = vpop.xlane.xlu0 %3074  ;;  %v3226_v43 = vsel %vm3009_vm4, %v7483_v22, 0.0 }
 0x2f7   : > { %6605 = vpow2.f32 %v3156_v56  ;;  %v3118_v5 = vsub.f32 %v7298_v13, %v3048_v42  ;;  %v3127_v26 = vsub.f32 %v7294_v9, %v3075_v12  ;;  %3227 = vadd.xlane.f32.xlu1 %v3226_v43 }
 0x2f9   : > { %v7489_v19 = vpop.eup %6599  ;;  %v3162_v23 = vmul.f32 1.442695, %v3118_v5  ;;  %v3180_v50 = vmul.f32 1.442695, %v3127_v26 }
 0x2fa   : > { %v3081_v14 = vpop.xlane.xlu0 %3080  ;;  %v3253_v30 = vsel %vm3009_vm4, %v7489_v19, 0.0 }
 0x2fb   : > { %6607 = vpow2.f32 %v3162_v23  ;;  %v3129_v21 = vsub.f32 %v7306_v20, %v3081_v14  ;;  %3254 = vadd.xlane.f32.xlu0 %v3253_v30 }
 0x2fc   : > { %6609 = vpow2.f32 %v3180_v50 }
 0x2fd   : > { %v7494_v29 = vpop.eup %6601  ;;  %v3184_v18 = vmul.f32 1.442695, %v3129_v21 }
 0x2fe   : > { %v7496_v13 = vpop.eup %6603  ;;  %v3054_v9 = vpop.xlane.xlu1 %3053  ;;  %v3232_v35 = vsel %vm3009_vm4, %v7494_v29, 0.0 }
 0x2ff   : > { %v3045_v41 = vpop.xlane.xlu0 %3044  ;;  %6611 = vpow2.f32 %v3184_v18  ;;  %v3120_v47 = vsub.f32 %v7316_v32, %v3054_v9  ;;  %3233 = vadd.xlane.f32.xlu1 %v3232_v35  ;;  %v3259_v20 = vsel %vm3009_vm4, %v7496_v13, 0.0 }
 0x300   : > { %v3117_v38 = vsub.f32 %v7312_v28, %v3045_v41  ;;  %3260 = vadd.xlane.f32.xlu0 %v3259_v20 }
 0x301   : > { %v7504_v56 = vpop.eup %6605  ;;  %v3166_v42 = vmul.f32 1.442695, %v3120_v47 }
 0x302   : > { %v3160_v12 = vmul.f32 1.442695, %v3117_v38  ;;  %v3229_v5 = vsel %vm3009_vm4, %v7504_v56, 0.0 }
 0x303   : > { %v3087_v43 = vpop.xlane.xlu0 %3086  ;;  %6613 = vpow2.f32 %v3166_v42 }
 0x304   : > { %v3131_v26 = vsub.f32 %v7324_v39, %v3087_v43  ;;  %6615 = vpow2.f32 %v3160_v12  ;;  %3230 = vadd.xlane.f32.xlu0 %v3229_v5 }
 0x305   : > { %v7509_v32 = vpop.eup %6607 }
 0x306   : > { %v3188_v28 = vmul.f32 1.442695, %v3131_v26  ;;  %v7511_v23 = vpop.eup %6609  ;;  %v3238_v14 = vsel %vm3009_vm4, %v7509_v32, 0.0 }
 0x307   : > { %v3093_v50 = vpop.xlane.xlu0 %3092  ;;  %3239 = vadd.xlane.f32.xlu1 %v3238_v14  ;;  %v3265_v21 = vsel %vm3009_vm4, %v7511_v23, 0.0 }
 0x308   : > { %6617 = vpow2.f32 %v3188_v28  ;;  %v3133_v30 = vsub.f32 %v7330_v49, %v3093_v50  ;;  %3266 = vadd.xlane.f32.xlu0 %v3265_v21 }
 0x309   : > { %v7518_v39 = vpop.eup %6611 }
 0x30a   : > { %v3192_v18 = vmul.f32 1.442695, %v3133_v30  ;;  %v3271_v41 = vsel %vm3009_vm4, %v7518_v39, 0.0 }
 0x30b   : > { %v3051_v9 = vpop.xlane.xlu0 %3050 }
 0x30c   : > { %v3119_v35 = vsub.f32 %v7342_v15, %v3051_v9  ;;  %6619 = vpow2.f32 %v3192_v18  ;;  %3272 = vadd.xlane.f32.xlu0 %v3271_v41 }
 0x30d   : > { %v7523_v47 = vpop.eup %6613 }
 0x30e   : > { %v3164_v38 = vmul.f32 1.442695, %v3119_v35  ;;  %v7525_v49 = vpop.eup %6615  ;;  %v3244_v42 = vsel %vm3009_vm4, %v7523_v47, 0.0 }
 0x30f   : > { %v3099_v20 = vpop.xlane.xlu0 %3098  ;;  %3245 = vadd.xlane.f32.xlu1 %v3244_v42  ;;  %v3235_v43 = vsel %vm3009_vm4, %v7525_v49, 0.0 }
 0x310   : > { %v3135_v12 = vsub.f32 %v7354_v25, %v3099_v20  ;;  %6621 = vpow2.f32 %v3164_v38  ;;  %3236 = vadd.xlane.f32.xlu0 %v3235_v43 }
 0x312   : > { %v7532_v15 = vpop.eup %6617  ;;  %v3196_v5 = vmul.f32 1.442695, %v3135_v12 }
 0x313   : > { %v3105_v26 = vpop.xlane.xlu0 %3104  ;;  %v3277_v28 = vsel %vm3009_vm4, %v7532_v15, 0.0 }
 0x314   : > { %6623 = vpow2.f32 %v3196_v5  ;;  %3278 = vadd.xlane.f32.xlu0 %v3277_v28  ;;  %v3137_v14 = vsub.f32 %v7366_v34, %v3105_v26 }
 0x316   : > { %v7536_v50 = vpop.eup %6619  ;;  %v3200_v41 = vmul.f32 1.442695, %v3137_v14 }
 0x317   : > { %v3057_v25 = vpop.xlane.xlu0 %3056  ;;  %v3283_v21 = vsel %vm3009_vm4, %v7536_v50, 0.0 }
 0x318   : > { %v3121_v30 = vsub.f32 %v7378_v48, %v3057_v25  ;;  %3284 = vadd.xlane.f32.xlu0 %v3283_v21 }
 0x31a   : > { %v3168_v18 = vmul.f32 1.442695, %v3121_v30  ;;  %v7542_v9 = vpop.eup %6621 }
 0x31b   : > { %v3241_v35 = vsel %vm3009_vm4, %v7542_v9, 0.0 }
 0x31c   : > { %6625 = vpow2.f32 %v3168_v18  ;;  %3242 = vadd.xlane.f32.xlu0 %v3241_v35 }
 0x31d   : > { %6627 = vpow2.f32 %v3200_v41 }
 0x31e   : > { %v7546_v38 = vpop.eup %6623 }
 0x31f   : > { %v3289_v34 = vsel %vm3009_vm4, %v7546_v38, 0.0 }
 0x320   : > { %3290 = vadd.xlane.f32.xlu0 %v3289_v34  ;;  %4730 = vrot.lane.b32.xlu1 %v6908_v58, %s6720_s25  ;;  %v3060_v58 = vpop.xlane.xlu1 %3059  ;;  %v7606_v34 = vpop.permute.xlu0 %4654 }
 0x324   : > { %4882 = vrot.lane.b32.xlu1 %v6916_v60, %s6720_s25  ;;  %v3066_v60 = vpop.xlane.xlu1 %3065 }
 0x326   : > { %v7554_v48 = vpop.eup %6625 }
 0x327   : > { %v3247_v20 = vsel %vm3009_vm4, %v7554_v48, 0.0  ;;  %v7558_v42 = vpop.eup %6627 }
 0x328   : > { %3248 = vadd.xlane.f32.xlu0 %v3247_v20  ;;  %4958 = vrot.lane.b32.xlu1 %v6914_v59, %s6720_s25  ;;  %v3295_v12 = vsel %vm3009_vm4, %v7558_v42, 0.0  ;;  %v3072_v43 = vpop.xlane.xlu1 %3071  ;;  %v3122_v59 = vsub.f32 %v7334_v54, %v3060_v58 }
 0x329   : > { %v3126_v26 = vsub.f32 %v7358_v27, %v3072_v43 }
 0x32a   : > { %v3170_v5 = vmul.f32 1.442695, %v3122_v59 }
 0x32c   : > { %3296 = vadd.xlane.f32.xlu0 %v3295_v12  ;;  %5110 = vrot.lane.b32.xlu1 %v6922_v61, %s6720_s25  ;;  %v3078_v61 = vpop.xlane.xlu1 %3077  ;;  %6629 = vpow2.f32 %v3170_v5 }
 0x32d   : > { %v3128_v54 = vsub.f32 %v7370_v37, %v3078_v61 }
 0x330   : > { %5262 = vrot.lane.b32.xlu1 %v6930_v63, %s6720_s25  ;;  %v3124_v63 = vsub.f32 %v7346_v17, %v3066_v60  ;;  %v3182_v17 = vmul.f32 1.442695, %v3128_v54  ;;  %v7904_v54 = vmov 0.0  }
 0x334   : > { %5414 = vrot.lane.b32.xlu1 %v6938_v1, %s6720_s25  ;;  %v3084_v1 = vpop.xlane.xlu1 %3083 }
 0x336   : > { %v7589_v28 = vpop.eup %6629 }
 0x337   : > { %v3250_v37 = vsel %vm3009_vm4, %v7589_v28, 0.0 }
 0x338   : > { %5566 = vrot.lane.b32.xlu1 %v6946_v3, %s6720_s25  ;;  %v3174_v3 = vmul.f32 1.442695, %v3124_v63 }
 0x33a   : > { %6631 = vpow2.f32 %v3174_v3 }
 0x342   : > { %4806 = vrot.lane.b32.xlu0 %v6906_v57, %s6720_s25  ;;  %v3178_v57 = vmul.f32 1.442695, %v3126_v26 }
 0x344   : > { %6633 = vpow2.f32 %v3178_v57  ;;  %v7594_v25 = vpop.eup %6631 }
 0x345   : > { %6635 = vpow2.f32 %v3182_v17 }
 0x346   : > { %5034 = vrot.lane.b32.xlu0 %v6924_v62, %s6720_s25  ;;  %v3090_v62 = vpop.xlane.xlu1 %3089 }
 0x347   : > { %v3132_v14 = vsub.f32 %v7390_v40, %v3090_v62 }
 0x34a   : > { %5186 = vrot.lane.b32.xlu0 %v6932_v0, %s6720_s25  ;;  %v3130_v0 = vsub.f32 %v7382_v53, %v3084_v1  ;;  %v3096_v27 = vpop.xlane.xlu1 %3095 }
 0x34b   : > { %v3134_v53 = vsub.f32 %v7396_v24, %v3096_v27 }
 0x34d   : > { %v3194_v18 = vmul.f32 1.442695, %v3134_v53  ;;  %v7905_v53 = vld [vmem:[#allocation3_spill] sm:$0xff] }
 0x34e   : > { %5338 = vrot.lane.b32.xlu0 %v6940_v2, %s6720_s25  ;;  %v3186_v2 = vmul.f32 1.442695, %v3130_v0  ;;  %v3102_v30 = vpop.xlane.xlu1 %3101  ;;  %v7599_v21 = vpop.eup %6633 }
 0x34f   : > { %v3136_v40 = vsub.f32 %v7402_v33, %v3102_v30  ;;  %v3262_v41 = vsel %vm3009_vm4, %v7599_v21, 0.0  ;;  %v7604_v35 = vpop.eup %6635 }
 0x350   : > { %6637 = vpow2.f32 %v3186_v2  ;;  %v3268_v12 = vsel %vm3009_vm4, %v7604_v35, 0.0 }
 0x351   : > { %v3198_v24 = vmul.f32 1.442695, %v3136_v40 }
 0x352   : > { %5490 = vrot.lane.b32.xlu0 %v6948_v4, %s6720_s25  ;;  %v3190_v4 = vmul.f32 1.442695, %v3132_v14 }
 0x354   : > { %6639 = vpow2.f32 %v3190_v4 }
 0x356   : > { %5642 = vrot.lane.b32.xlu0 %v6956_v6, %s6720_s25  ;;  %v3256_v6 = vsel %vm3009_vm4, %v7594_v25, 0.0 }
 0x35a   : > { %v7610_v58 = vpop.eup %6637 }
 0x35b   : > { %v3274_v33 = vsel %vm3009_vm4, %v7610_v58, 0.0 }
 0x35c   : > { %3251 = vadd.xlane.f32.xlu1 %v3250_v37 }
 0x35e   : > { %v7614_v43 = vpop.eup %6639 }
 0x35f   : > { %v3280_v5 = vsel %vm3009_vm4, %v7614_v43, 0.0 }
 0x360   : > { %3257 = vadd.xlane.f32.xlu1 %v3256_v6 }
 0x364   : > { %v3204_v20 = vpop.xlane.xlu1 %3203  ;;  %3263 = vadd.xlane.f32.xlu1 %v3262_v41 }
 0x365   : > { %6641 = vrcp.f32 %v3204_v20 }
 0x366   : > { %6643 = vpow2.f32 %v3194_v18  ;;  %v7907_v18 = vld [vmem:[#allocation4_spill] sm:$0xff] }
 0x368   : > { %3269 = vadd.xlane.f32.xlu1 %v3268_v12  ;;  %v3207_v60 = vpop.xlane.xlu0 %3206 }
 0x369   : > { %6645 = vrcp.f32 %v3207_v60 }
 0x36a   : > { %6647 = vpow2.f32 %v3198_v24  ;;  %v7908_v24 = vld [vmem:[#allocation5_spill] sm:$0xff] }
 0x36c   : > { %3275 = vadd.xlane.f32.xlu1 %v3274_v33  ;;  %v3210_v59 = vpop.xlane.xlu1 %3209 }
 0x36d   : > { %6649 = vrcp.f32 %v3210_v59 }
 0x36f   : > { %v6642_v61 = vpop.eup %6641 }
 0x370   : > { %v7618_v63 = vpop.eup %6643  ;;  %v3330_v1 = vmul.f32 %v6642_v61, %v7442_v55  ;;  %3281 = vadd.xlane.f32.xlu1 %v3280_v5  ;;  %v3213_v3 = vpop.xlane.xlu0 %3212 }
 0x371   : > { %6651 = vrcp.f32 %v3213_v3  ;;  %v3286_v57 = vsel %vm3009_vm4, %v7618_v63, 0.0 }
 0x372   : > { %6404 = vmatmul.mubr.msk.f32.vlgmr.msra.gmra.mrb[48].mxu1 %vm3009_vm4, %v3330_v1  ;;  %v7910_v1 = vld [vmem:[#allocation8_spill] sm:$0xff] }
 0x373   : > { %v6646_v26 = vpop.eup %6645  ;;  %6412 = vmatpush3.msra.mxu1 %v7406_v44  ;;  %6413 = vmatprep.mubr.msk.f32.mxu1 %vm6718_vm1, %v7904_v54 }
 0x374   : > { %v7627_v62 = vpop.eup %6647  ;;  %v3331_v17 = vmul.f32 %v6646_v26, %v7447_v51  ;;  %3287 = vadd.xlane.f32.xlu1 %v3286_v57  ;;  %v3216_v55 = vpop.xlane.xlu1 %3215  ;;  %6421 = vmatprep.subr.mxu1 %v7904_v54 }
 0x375   : > { %6653 = vrcp.f32 %v3216_v55  ;;  %v3292_v44 = vsel %vm3009_vm4, %v7627_v62, 0.0 }
 0x376   : > { %6409 = vmatmul.mubr.msk.f32.vlgmr.msra.gmra.mrb[48].mxu0 %vm3009_vm4, %v3331_v17 }
 0x377   : > { %v6650_v0 = vpop.eup %6649  ;;  %6417 = vmatpush3.msra.mxu0 %v7408_v46  ;;  %6418 = vmatprep.mubr.msk.f32.mxu0 %vm6718_vm1, %v7904_v54 }
 0x378   : > { %v3332_v27 = vmul.f32 %v6650_v0, %v7452_v10  ;;  %3293 = vadd.xlane.f32.xlu1 %v3292_v44  ;;  %v3219_v51 = vpop.xlane.xlu0 %3218  ;;  %6426 = vmatprep.subr.mxu0 %v7904_v54  ;;  %v7911_v0 = vld [vmem:[#allocation7_spill] sm:$0xff] }
 0x379   : > { %6655 = vrcp.f32 %v3219_v51 }
 0x37a   : > { %6414 = vmatmul.mubr.msk.f32.vlgmr.msra.gmra.mrb[50].mxu1 %vm3009_vm4, %v3332_v27  ;;  %v7912_v27 = vld [vmem:[#allocation10_spill] sm:$0xff] }
 0x37b   : > { %v6652_v2 = vpop.eup %6651  ;;  %6422 = vmatpush3.msra.mxu1 %v7412_v52  ;;  %6423 = vmatprep.mubr.msk.f32.mxu1 %vm6718_vm1, %v7904_v54 }
 0x37c   : > { %v3333_v46 = vmul.f32 %v6652_v2, %v7457_v45  ;;  %v3222_v14 = vpop.xlane.xlu1 %3221  ;;  %6431 = vmatprep.subr.mxu1 %v7904_v54 }
 0x37d   : > { %6657 = vrcp.f32 %v3222_v14 }
 0x37e   : > { %6419 = vmatmul.mubr.msk.f32.vlgmr.msra.gmra.mrb[50].mxu0 %vm3009_vm4, %v3333_v46 }
 0x37f   : > { %v6654_v10 = vpop.eup %6653  ;;  %6427 = vmatpush3.msra.mxu0 %v7414_v7  ;;  %6428 = vmatprep.mubr.msk.f32.mxu0 %vm6718_vm1, %v7904_v54 }
 0x380   : > { %v3334_v37 = vmul.f32 %v6654_v10, %v7462_v36  ;;  %v3225_v52 = vpop.xlane.xlu0 %3224  ;;  %6436 = vmatprep.subr.mxu0 %v7904_v54  ;;  %v7913_v10 = vld [vmem:[#allocation12_spill] sm:$0xff] }
 0x381   : > { %6659 = vrcp.f32 %v3225_v52 }
 0x382   : > { %6424 = vmatmul.mubr.msk.f32.vlgmr.msra.gmra.mrb[52].mxu1 %vm3009_vm4, %v3334_v37  ;;  %v7914_v37 = vld [vmem:[#allocation9_spill] sm:$0xff] }
 0x383   : > { %v6656_v45 = vpop.eup %6655  ;;  %6432 = vmatpush3.msra.mxu1 %v7416_v8  ;;  %6433 = vmatprep.mubr.msk.f32.mxu1 %vm6718_vm1, %v7904_v54 }
 0x384   : > { %v3335_v4 = vmul.f32 %v6656_v45, %v7467_v11  ;;  %v3228_v7 = vpop.xlane.xlu1 %3227  ;;  %6441 = vmatprep.subr.mxu1 %v7904_v54  ;;  %v7906_v11 = vld [vmem:[#allocation2_spill] sm:$0xff] }
 0x385   : > { %6661 = vrcp.f32 %v3228_v7  ;;  %v7915_v7 = vld [vmem:[#allocation11_spill] sm:$0xff] }
 0x386   : > { %6429 = vmatmul.mubr.msk.f32.vlgmr.msra.gmra.mrb[52].mxu0 %vm3009_vm4, %v3335_v4 }
 0x387   : > { %v6658_v36 = vpop.eup %6657  ;;  %6437 = vmatpush3.msra.mxu0 %v7905_v53  ;;  %6438 = vmatprep.mubr.msk.f32.mxu0 %vm6718_vm1, %v7904_v54 }
 0x388   : > { %v3336_v30 = vmul.f32 %v6658_v36, %v7472_v16  ;;  %v7662_v8 = vpop.xlane.xlu0 %3254  ;;  %6446 = vmatprep.subr.mxu0 %v7904_v54 }
 0x389   : > { %5718 = vrot.lane.b32.xlu1 %v7906_v11, %s6720_s25 }
 0x38a   : > { %6434 = vmatmul.mubr.msk.f32.vlgmr.msra.gmra.mrb[54].mxu1 %vm3009_vm4, %v3336_v30 }
 0x38b   : > { %v6660_v6 = vpop.eup %6659  ;;  %6442 = vmatpush3.msra.mxu1 %v7907_v18  ;;  %6443 = vmatprep.mubr.msk.f32.mxu1 %vm6718_vm1, %v7904_v54 }
 0x38c   : > { %v3337_v40 = vmul.f32 %v6660_v6, %v7478_v31  ;;  %v3234_v41 = vpop.xlane.xlu1 %3233  ;;  %6451 = vmatprep.subr.mxu1 %v7904_v54  ;;  %v7909_v31 = vld [vmem:[#allocation6_spill] sm:$0xff] }
 0x38d   : > { %6663 = vrcp.f32 %v3234_v41  ;;  %v7673_v16 = vpop.xlane.xlu0 %3260 }
 0x38e   : > { %6439 = vmatmul.mubr.msk.f32.vlgmr.msra.gmra.mrb[54].mxu0 %vm3009_vm4, %v3337_v40 }
 0x38f   : > { %v6662_v20 = vpop.eup %6661  ;;  %6447 = vmatpush3.msra.mxu0 %v7908_v24  ;;  %6448 = vmatprep.mubr.msk.f32.mxu0 %vm6718_vm1, %v7904_v54 }
 0x390   : > { %v3338_v12 = vmul.f32 %v6662_v20, %v7483_v22  ;;  %6456 = vmatprep.subr.mxu0 %v7904_v54 }
 0x391   : > { %v3231_v60 = vpop.xlane.xlu0 %3230 }
 0x392   : > { %6665 = vrcp.f32 %v3231_v60  ;;  %6444 = vmatmul.mubr.msk.f32.vlgmr.msra.gmra.mrb[56].mxu1 %vm3009_vm4, %v3338_v12 }
 0x393   : > { %6452 = vmatpush3.msra.mxu1 %v7909_v31  ;;  %6453 = vmatprep.mubr.msk.f32.mxu1 %vm6718_vm1, %v7904_v54 }
 0x394   : > { %v3240_v33 = vpop.xlane.xlu1 %3239  ;;  %6461 = vmatprep.subr.mxu1 %v7904_v54 }
 0x395   : > { %6667 = vrcp.f32 %v3240_v33  ;;  %v3267_v59 = vpop.xlane.xlu0 %3266 }
 0x397   : > { %v6664_v61 = vpop.eup %6663 }
 0x398   : > { %v3340_v5 = vmul.f32 %v6664_v61, %v7494_v29 }
 0x399   : > { %v3273_v22 = vpop.xlane.xlu0 %3272 }
 0x39a   : > { %6454 = vmatmul.mubr.msk.f32.vlgmr.msra.gmra.mrb[58].mxu1 %vm3009_vm4, %v3340_v5 }
 0x39b   : > { %6462 = vmatpush3.msra.mxu1 %v7910_v1  ;;  %6463 = vmatprep.mubr.msk.f32.mxu1 %vm6718_vm1, %v7904_v54 }
 0x39c   : > { %v6666_v3 = vpop.eup %6665  ;;  %v3246_v26 = vpop.xlane.xlu1 %3245  ;;  %6471 = vmatprep.subr.mxu1 %v7904_v54 }
 0x39d   : > { %v3339_v57 = vmul.f32 %v6666_v3, %v7504_v56  ;;  %6669 = vrcp.f32 %v3246_v26  ;;  %v3237_v17 = vpop.xlane.xlu0 %3236 }
 0x39e   : > { %6671 = vrcp.f32 %v3237_v17 }
 0x39f   : > { %v6668_v55 = vpop.eup %6667  ;;  %6449 = vmatmul.mubr.msk.f32.vlgmr.msra.gmra.mrb[56].mxu0 %vm3009_vm4, %v3339_v57 }
 0x3a0   : > { %v3342_v29 = vmul.f32 %v6668_v55, %v7509_v32  ;;  %6457 = vmatpush3.msra.mxu0 %v7911_v0  ;;  %6458 = vmatprep.mubr.msk.f32.mxu0 %vm6718_vm1, %v7904_v54  ;;  %v7717_v4 = vpop.permute.xlu1 %4730 }
 0x3a1   : > { %v3279_v44 = vpop.xlane.xlu0 %3278  ;;  %6466 = vmatprep.subr.mxu0 %v7904_v54 }
 0x3a2   : > { %6464 = vmatmul.mubr.msk.f32.vlgmr.msra.gmra.mrb[60].mxu1 %vm3009_vm4, %v3342_v29 }
 0x3a3   : > { %6472 = vmatpush3.msra.mxu1 %v7912_v27  ;;  %6473 = vmatprep.mubr.msk.f32.mxu1 %vm6718_vm1, %v7904_v54 }
 0x3a4   : > { %6481 = vmatprep.subr.mxu1 %v7904_v54  ;;  %v7726_v36 = vpop.permute.xlu1 %4882 }
 0x3a5   : > { %v3285_v56 = vpop.xlane.xlu0 %3284 }
 0x3a7   : > { %v6670_v51 = vpop.eup %6669 }
 0x3a8   : > { %v6672_v32 = vpop.eup %6671  ;;  %v3344_v2 = vmul.f32 %v6670_v51, %v7523_v47  ;;  %v4959_v6 = vpop.permute.xlu1 %4958 }
 0x3a9   : > { %v3341_v46 = vmul.f32 %v6672_v32, %v7525_v49  ;;  %v3243_v14 = vpop.xlane.xlu0 %3242 }
 0x3aa   : > { %6673 = vrcp.f32 %v3243_v14  ;;  %6474 = vmatmul.mubr.msk.f32.vlgmr.msra.gmra.mrb[62].mxu1 %vm3009_vm4, %v3344_v2 }
 0x3ab   : > { %6459 = vmatmul.mubr.msk.f32.vlgmr.msra.gmra.mrb[58].mxu0 %vm3009_vm4, %v3341_v46  ;;  %6482 = vmatpush3.msra.mxu1 %v7913_v10 }
 0x3ac   : > { %6467 = vmatpush3.msra.mxu0 %v7914_v37  ;;  %6468 = vmatprep.mubr.msk.f32.mxu0 %vm6718_vm1, %v7904_v54  ;;  %v5111_v41 = vpop.permute.xlu1 %5110 }
 0x3ad   : > { %6476 = vmatprep.subr.mxu0 %v7904_v54  ;;  %6483 = vmatprep.mubr.msk.f32.mxu1 %vm6718_vm1, %v7904_v54  ;;  %v3291_v47 = vpop.xlane.xlu0 %3290 }
 0x3ae   : > { %6491 = vmatprep.subr.mxu1 %v7904_v54 }
 0x3b0   : > { %v5263_v20 = vpop.permute.xlu1 %5262 }
 0x3b4   : > { %v6674_v49 = vpop.eup %6673  ;;  %v5415_v12 = vpop.permute.xlu1 %5414 }
 0x3b5   : > { %v3343_v52 = vmul.f32 %v6674_v49, %v7542_v9  ;;  %v3249_v45 = vpop.xlane.xlu0 %3248 }
 0x3b6   : > { %6675 = vrcp.f32 %v3249_v45 }
 0x3b7   : > { %6469 = vmatmul.mubr.msk.f32.vlgmr.msra.gmra.mrb[60].mxu0 %vm3009_vm4, %v3343_v52  ;;  %6677 = vrcp.f32 %v7662_v8 }
 0x3b8   : > { %6477 = vmatpush3.msra.mxu0 %v7915_v7  ;;  %6478 = vmatprep.mubr.msk.f32.mxu0 %vm6718_vm1, %v7904_v54  ;;  %6679 = vrcp.f32 %v7673_v16  ;;  %v5567_v33 = vpop.permute.xlu1 %5566 }
 0x3b9   : > { %6486 = vmatprep.subr.mxu0 %v7904_v54  ;;  %6681 = vrcp.f32 %v3267_v59  ;;  %v7729_v30 = vpop.xlane.xlu0 %3296 }
 0x3ba   : > { %6683 = vrcp.f32 %v3273_v22 }
 0x3bb   : > { %6685 = vrcp.f32 %v3279_v44 }
 0x3bc   : > { %6687 = vrcp.f32 %v3285_v56 }
 0x3bd   : > { %v4807_v40 = vpop.permute.xlu0 %4806  ;;  %6689 = vrcp.f32 %v3291_v47 }
 0x3c0   : > { %v6676_v9 = vpop.eup %6675 }
 0x3c1   : > { %v3345_v53 = vmul.f32 %v6676_v9, %v7554_v48  ;;  %v6678_v11 = vpop.eup %6677  ;;  %v5035_v3 = vpop.permute.xlu0 %5034 }
 0x3c2   : > { %v3347_v8 = vmul.f32 %v6678_v11, %v7489_v19  ;;  %v6680_v18 = vpop.eup %6679 }
 0x3c3   : > { %6479 = vmatmul.mubr.msk.f32.vlgmr.msra.gmra.mrb[62].mxu0 %vm3009_vm4, %v3345_v53  ;;  %v3349_v48 = vmul.f32 %v6680_v18, %v7496_v13 }
 0x3c4   : > { %6487 = vmatpush3.msra.mxu0 %v7606_v34  ;;  %6488 = vmatprep.mubr.msk.f32.mxu0 %vm6718_vm1, %v7904_v54  ;;  %v6682_v34 = vpop.eup %6681 }
 0x3c5   : > { %6496 = vmatprep.subr.mxu0 %v7904_v54  ;;  %v3351_v19 = vmul.f32 %v6682_v34, %v7511_v23  ;;  %v6684_v16 = vpop.eup %6683  ;;  %v5187_v17 = vpop.permute.xlu0 %5186 }
 0x3c6   : > { %v3353_v13 = vmul.f32 %v6684_v16, %v7518_v39  ;;  %v6686_v24 = vpop.eup %6685 }
 0x3c7   : > { %6489 = vmatmul.mubr.msk.f32.vlgmr.msra.gmra.mrb[64].mxu0 %vm3009_vm4, %v3347_v8  ;;  %v3355_v23 = vmul.f32 %v6686_v24, %v7532_v15  ;;  %v6688_v60 = vpop.eup %6687 }
 0x3c8   : > { %6497 = vmatpush3.msra.mxu0 %v4807_v40  ;;  %6498 = vmatprep.mubr.msk.f32.mxu0 %vm6718_vm1, %v7904_v54  ;;  %v3357_v39 = vmul.f32 %v6688_v60, %v7536_v50  ;;  %v6690_v31 = vpop.eup %6689 }
 0x3c9   : > { %6506 = vmatprep.subr.mxu0 %v7904_v54  ;;  %v3359_v15 = vmul.f32 %v6690_v31, %v7546_v38  ;;  %v5339_v27 = vpop.permute.xlu0 %5338 }
 0x3cb   : > { %6499 = vmatmul.mubr.msk.f32.vlgmr.msra.gmra.mrb[66].mxu0 %vm3009_vm4, %v3349_v48 }
 0x3cc   : > { %6507 = vmatpush3.msra.mxu0 %v4959_v6  ;;  %6508 = vmatprep.mubr.msk.f32.mxu0 %vm6718_vm1, %v7904_v54 }
 0x3cd   : > { %6516 = vmatprep.subr.mxu0 %v7904_v54  ;;  %v5491_v46 = vpop.permute.xlu0 %5490 }
 0x3cf   : > { %6509 = vmatmul.mubr.msk.f32.vlgmr.msra.gmra.mrb[68].mxu0 %vm3009_vm4, %v3351_v19 }
 0x3d0   : > { %6517 = vmatpush3.msra.mxu0 %v5111_v41  ;;  %6518 = vmatprep.mubr.msk.f32.mxu0 %vm6718_vm1, %v7904_v54 }
 0x3d1   : > { %6526 = vmatprep.subr.mxu0 %v7904_v54 }
 0x3d3   : > { %6519 = vmatmul.mubr.msk.f32.vlgmr.msra.gmra.mrb[70].mxu0 %vm3009_vm4, %v3353_v13 }
 0x3d4   : > { %6527 = vmatpush3.msra.mxu0 %v5263_v20  ;;  %6528 = vmatprep.mubr.msk.f32.mxu0 %vm6718_vm1, %v7904_v54 }
 0x3d5   : > { %6536 = vmatprep.subr.mxu0 %v7904_v54 }
 0x3d7   : > { %6529 = vmatmul.mubr.msk.f32.vlgmr.msra.gmra.mrb[72].mxu0 %vm3009_vm4, %v3355_v23 }
 0x3d8   : > { %6537 = vmatpush3.msra.mxu0 %v5415_v12  ;;  %6538 = vmatprep.mubr.msk.f32.mxu0 %vm6718_vm1, %v7904_v54 }
 0x3d9   : > { %6546 = vmatprep.subr.mxu0 %v7904_v54 }
 0x3db   : > { %6539 = vmatmul.mubr.msk.f32.vlgmr.msra.gmra.mrb[74].mxu0 %vm3009_vm4, %v3357_v39 }
 0x3dc   : > { %6547 = vmatpush3.msra.mxu0 %v5567_v33  ;;  %6548 = vmatprep.mubr.msk.f32.mxu0 %vm6718_vm1, %v7904_v54 }
 0x3dd   : > { %6556 = vmatprep.subr.mxu0 %v7904_v54 }
 0x3df   : > { %6549 = vmatmul.mubr.msk.f32.vlgmr.msra.gmra.mrb[76].mxu0 %vm3009_vm4, %v3359_v15 }
 0x3e0   : > { %6558 = vmatprep.mubr.msk.f32.mxu0 %vm6718_vm1, %v7904_v54 }
 0x3e9   : > { %v3252_v50 = vpop.xlane.xlu1 %3251 }
 0x3ea   : > { %6691 = vrcp.f32 %v3252_v50 }
 0x3ed   : > { %v3258_v59 = vpop.xlane.xlu1 %3257 }
 0x3ee   : > { %6693 = vrcp.f32 %v3258_v59 }
 0x3f1   : > { %v3264_v61 = vpop.xlane.xlu1 %3263 }
 0x3f2   : > { %6695 = vrcp.f32 %v3264_v61 }
 0x3f4   : > { %v6692_v5 = vpop.eup %6691 }
 0x3f5   : > { %v3346_v22 = vmul.f32 %v6692_v5, %v7589_v28  ;;  %v3270_v1 = vpop.xlane.xlu1 %3269 }
 0x3f6   : > { %6697 = vrcp.f32 %v3270_v1 }
 0x3f7   : > { %6484 = vmatmul.mubr.msk.f32.vlgmr.msra.gmra.mrb[64].mxu1 %vm3009_vm4, %v3346_v22 }
 0x3f8   : > { %v6694_v38 = vpop.eup %6693  ;;  %6492 = vmatpush3.msra.mxu1 %v7717_v4  ;;  %6493 = vmatprep.mubr.msk.f32.mxu1 %vm6718_vm1, %v7904_v54 }
 0x3f9   : > { %v3348_v26 = vmul.f32 %v6694_v38, %v7594_v25  ;;  %v3276_v57 = vpop.xlane.xlu1 %3275  ;;  %6501 = vmatprep.subr.mxu1 %v7904_v54 }
 0x3fa   : > { %6699 = vrcp.f32 %v3276_v57 }
 0x3fb   : > { %6494 = vmatmul.mubr.msk.f32.vlgmr.msra.gmra.mrb[66].mxu1 %vm3009_vm4, %v3348_v26  ;;  %6701 = vrcp.f32 %v7729_v30 }
 0x3fc   : > { %v6696_v28 = vpop.eup %6695  ;;  %6502 = vmatpush3.msra.mxu1 %v7726_v36  ;;  %6503 = vmatprep.mubr.msk.f32.mxu1 %vm6718_vm1, %v7904_v54 }
 0x3fd   : > { %v3350_v55 = vmul.f32 %v6696_v28, %v7599_v21  ;;  %v3282_v29 = vpop.xlane.xlu1 %3281  ;;  %6511 = vmatprep.subr.mxu1 %v7904_v54 }
 0x3fe   : > { %6703 = vrcp.f32 %v3282_v29 }
 0x3ff   : > { %6504 = vmatmul.mubr.msk.f32.vlgmr.msra.gmra.mrb[68].mxu1 %vm3009_vm4, %v3350_v55 }
 0x400   : > { %v6698_v25 = vpop.eup %6697  ;;  %6512 = vmatpush3.msra.mxu1 %v5035_v3  ;;  %6513 = vmatprep.mubr.msk.f32.mxu1 %vm6718_vm1, %v7904_v54 }
 0x401   : > { %v3352_v0 = vmul.f32 %v6698_v25, %v7604_v35  ;;  %v3288_v44 = vpop.xlane.xlu1 %3287  ;;  %6521 = vmatprep.subr.mxu1 %v7904_v54 }
 0x402   : > { %6705 = vrcp.f32 %v3288_v44 }
 0x403   : > { %6514 = vmatmul.mubr.msk.f32.vlgmr.msra.gmra.mrb[70].mxu1 %vm3009_vm4, %v3352_v0 }
 0x404   : > { %v6700_v21 = vpop.eup %6699  ;;  %6522 = vmatpush3.msra.mxu1 %v5187_v17  ;;  %6523 = vmatprep.mubr.msk.f32.mxu1 %vm6718_vm1, %v7904_v54 }
 0x405   : > { %v3354_v56 = vmul.f32 %v6700_v21, %v7610_v58  ;;  %v3294_v51 = vpop.xlane.xlu1 %3293  ;;  %6531 = vmatprep.subr.mxu1 %v7904_v54  ;;  %v6702_v32 = vpop.eup %6701 }
 0x406   : > { %6707 = vrcp.f32 %v3294_v51  ;;  %v3361_v2 = vmul.f32 %v6702_v32, %v7558_v42  ;;  %v5643_v42 = vpop.permute.xlu0 %5642 }
 0x407   : > { %6524 = vmatmul.mubr.msk.f32.vlgmr.msra.gmra.mrb[72].mxu1 %vm3009_vm4, %v3354_v56 }
 0x408   : > { %v6704_v35 = vpop.eup %6703  ;;  %6532 = vmatpush3.msra.mxu1 %v5339_v27  ;;  %6533 = vmatprep.mubr.msk.f32.mxu1 %vm6718_vm1, %v7904_v54 }
 0x409   : > { %v3356_v14 = vmul.f32 %v6704_v35, %v7614_v43  ;;  %v5719_v10 = vpop.permute.xlu1 %5718  ;;  %6541 = vmatprep.subr.mxu1 %v7904_v54 }
 0x40a   : > { %6557 = vmatpush3.msra.mxu0 %v5719_v10 }
 0x40b   : > { %6534 = vmatmul.mubr.msk.f32.vlgmr.msra.gmra.mrb[74].mxu1 %vm3009_vm4, %v3356_v14  ;;  %6559 = vmatmul.mubr.msk.f32.vlgmr.msra.gmra.mrb[78].mxu0 %vm3009_vm4, %v3361_v2 }
 0x40c   : > { %v6706_v58 = vpop.eup %6705  ;;  %6542 = vmatpush3.msra.mxu1 %v5491_v46  ;;  %6543 = vmatprep.mubr.msk.f32.mxu1 %vm6718_vm1, %v7904_v54 }
 0x40d   : > { %v3358_v37 = vmul.f32 %v6706_v58, %v7618_v63  ;;  %6551 = vmatprep.subr.mxu1 %v7904_v54 }
 0x40f   : > { %6544 = vmatmul.mubr.msk.f32.vlgmr.msra.gmra.mrb[76].mxu1 %vm3009_vm4, %v3358_v37 }
 0x410   : > { %v6708_v43 = vpop.eup %6707  ;;  %6552 = vmatpush3.msra.mxu1 %v5643_v42  ;;  %6553 = vmatprep.mubr.msk.f32.mxu1 %vm6718_vm1, %v7904_v54 }
 0x411   : > { %v3360_v47 = vmul.f32 %v6708_v43, %v7627_v62 }
 0x413   : > { %6554 = vmatmul.mubr.msk.f32.vlgmr.msra.gmra.mrb[78].mxu1 %vm3009_vm4, %v3360_v47 }
 0x445   : > { %v3434_v63 = vpop.f32.mrb[48].mxu1 }
 0x446   : > { %5794 = vst.msk [vmem:[%s7816_s28] sm:$0xff] %vm508_vm2, %v3434_v63  ;;  %v6405_v54 = vpop.f32.mrb[49].mxu1 }
 0x449   : > { %v3510_v49 = vpop.f32.mrb[48].mxu0 }
 0x44a   : > { %5795 = vst.msk [vmem:[%s7816_s28 + $0x8] sm:$0xff] %vm508_vm2, %v3510_v49  ;;  %v6410_v62 = vpop.f32.mrb[49].mxu0 }
 0x44d   : > { %v3586_v52 = vpop.f32.mrb[50].mxu1 }
 0x44e   : > { %5796 = vst.msk [vmem:[%s7816_s28 + $0x10] sm:$0xff] %vm508_vm2, %v3586_v52  ;;  %v6415_v45 = vpop.f32.mrb[51].mxu1 }
 0x451   : > { %v3662_v4 = vpop.f32.mrb[50].mxu0 }
 0x452   : > { %5797 = vst.msk [vmem:[%s7816_s28 + $0x18] sm:$0xff] %vm508_vm2, %v3662_v4  ;;  %v6420_v7 = vpop.f32.mrb[51].mxu0 }
 0x455   : > { %v3738_v36 = vpop.f32.mrb[52].mxu1 }
 0x456   : > { %5798 = vst.msk [vmem:[%s7816_s28 + $0x20] sm:$0xff] %vm508_vm2, %v3738_v36  ;;  %v6425_v9 = vpop.f32.mrb[53].mxu1 }
 0x459   : > { %v3814_v53 = vpop.f32.mrb[52].mxu0 }
 0x45a   : > { %5799 = vst.msk [vmem:[%s7816_s28 + $0x28] sm:$0xff] %vm508_vm2, %v3814_v53  ;;  %v6430_v30 = vpop.f32.mrb[53].mxu0 }
 0x45d   : > { %v3890_v11 = vpop.f32.mrb[54].mxu1 }
 0x45e   : > { %5800 = vst.msk [vmem:[%s7816_s28 + $0x30] sm:$0xff] %vm508_vm2, %v3890_v11  ;;  %v6435_v6 = vpop.f32.mrb[55].mxu1 }
 0x461   : > { %v3966_v8 = vpop.f32.mrb[54].mxu0 }
 0x462   : > { %5801 = vst.msk [vmem:[%s7816_s28 + $0x38] sm:$0xff] %vm508_vm2, %v3966_v8  ;;  %v6440_v18 = vpop.f32.mrb[55].mxu0 }
 0x465   : > { %v4042_v40 = vpop.f32.mrb[56].mxu1 }
 0x466   : > { %5802 = vst.msk [vmem:[%s7816_s28 + $0x40] sm:$0xff] %vm508_vm2, %v4042_v40  ;;  %v6445_v48 = vpop.f32.mrb[57].mxu1 }
 0x46d   : > { %v4194_v41 = vpop.f32.mrb[58].mxu1 }
 0x46e   : > { %5804 = vst.msk [vmem:[%s7816_s28 + $0x50] sm:$0xff] %vm508_vm2, %v4194_v41  ;;  %v6455_v34 = vpop.f32.mrb[59].mxu1 }
 0x472   : > { %v4118_v19 = vpop.f32.mrb[56].mxu0 }
 0x473   : > { %5803 = vst.msk [vmem:[%s7816_s28 + $0x48] sm:$0xff] %vm508_vm2, %v4118_v19  ;;  %v6450_v16 = vpop.f32.mrb[57].mxu0 }
 0x475   : > { %v4346_v20 = vpop.f32.mrb[60].mxu1 }
 0x476   : > { %5806 = vst.msk [vmem:[%s7816_s28 + $0x60] sm:$0xff] %vm508_vm2, %v4346_v20  ;;  %v6465_v13 = vpop.f32.mrb[61].mxu1 }
 0x47d   : > { %v4498_v24 = vpop.f32.mrb[62].mxu1 }
 0x47e   : > { %v4270_v23 = vpop.f32.mrb[58].mxu0  ;;  %5808 = vst.msk [vmem:[%s7816_s28 + $0x70] sm:$0xff] %vm508_vm2, %v4498_v24  ;;  %v6475_v12 = vpop.f32.mrb[63].mxu1 }
 0x47f   : > { %5805 = vst.msk [vmem:[%s7816_s28 + $0x58] sm:$0xff] %vm508_vm2, %v4270_v23  ;;  %v6460_v60 = vpop.f32.mrb[59].mxu0 }
 0x48a   : > { %v4422_v39 = vpop.f32.mrb[60].mxu0 }
 0x48b   : > { %5807 = vst.msk [vmem:[%s7816_s28 + $0x68] sm:$0xff] %vm508_vm2, %v4422_v39  ;;  %v6470_v31 = vpop.f32.mrb[61].mxu0 }
 0x496   : > { %v4574_v33 = vpop.f32.mrb[62].mxu0 }
 0x497   : > { %5809 = vst.msk [vmem:[%s7816_s28 + $0x78] sm:$0xff] %vm508_vm2, %v4574_v33  ;;  %v6480_v15 = vpop.f32.mrb[63].mxu0 }
 0x49a   : > { %v4726_v50 = vpop.f32.mrb[64].mxu0 }
 0x49b   : > { %5811 = vst.msk [vmem:[%s7816_s28 + $0x88] sm:$0xff] %vm508_vm2, %v4726_v50  ;;  %v6490_v59 = vpop.f32.mrb[65].mxu0 }
 0x49e   : > { %v4878_v61 = vpop.f32.mrb[66].mxu0 }
 0x49f   : > { %5813 = vst.msk [vmem:[%s7816_s28 + $0x98] sm:$0xff] %vm508_vm2, %v4878_v61  ;;  %v6500_v5 = vpop.f32.mrb[67].mxu0 }
 0x4a2   : > { %v5030_v22 = vpop.f32.mrb[68].mxu0 }
 0x4a3   : > { %5815 = vst.msk [vmem:[%s7816_s28 + $0xa8] sm:$0xff] %vm508_vm2, %v5030_v22  ;;  %v6510_v1 = vpop.f32.mrb[69].mxu0 }
 0x4a6   : > { %v5182_v3 = vpop.f32.mrb[70].mxu0 }
 0x4a7   : > { %5817 = vst.msk [vmem:[%s7816_s28 + $0xb8] sm:$0xff] %vm508_vm2, %v5182_v3  ;;  %v6520_v38 = vpop.f32.mrb[71].mxu0 }
 0x4aa   : > { %v5334_v26 = vpop.f32.mrb[72].mxu0 }
 0x4ab   : > { %5819 = vst.msk [vmem:[%s7816_s28 + $0xc8] sm:$0xff] %vm508_vm2, %v5334_v26  ;;  %v6530_v57 = vpop.f32.mrb[73].mxu0 }
 0x4ae   : > { %v5486_v28 = vpop.f32.mrb[74].mxu0 }
 0x4af   : > { %5821 = vst.msk [vmem:[%s7816_s28 + $0xd8] sm:$0xff] %vm508_vm2, %v5486_v28  ;;  %v6540_v17 = vpop.f32.mrb[75].mxu0 }
 0x4b2   : > { %v5638_v55 = vpop.f32.mrb[76].mxu0 }
 0x4b3   : > { %5823 = vst.msk [vmem:[%s7816_s28 + $0xe8] sm:$0xff] %vm508_vm2, %v5638_v55  ;;  %v6550_v29 = vpop.f32.mrb[77].mxu0 }
 0x4ca   : > { %v4650_v25 = vpop.f32.mrb[64].mxu1 }
 0x4cb   : > { %5810 = vst.msk [vmem:[%s7816_s28 + $0x80] sm:$0xff] %vm508_vm2, %v4650_v25  ;;  %v6485_v0 = vpop.f32.mrb[65].mxu1 }
 0x4ce   : > { %v4802_v44 = vpop.f32.mrb[66].mxu1 }
 0x4cf   : > { %5812 = vst.msk [vmem:[%s7816_s28 + $0x90] sm:$0xff] %vm508_vm2, %v4802_v44  ;;  %v6495_v27 = vpop.f32.mrb[67].mxu1 }
 0x4d2   : > { %v4954_v21 = vpop.f32.mrb[68].mxu1 }
 0x4d3   : > { %5814 = vst.msk [vmem:[%s7816_s28 + $0xa0] sm:$0xff] %vm508_vm2, %v4954_v21  ;;  %v6505_v56 = vpop.f32.mrb[69].mxu1 }
 0x4d6   : > { %v5106_v51 = vpop.f32.mrb[70].mxu1 }
 0x4d7   : > { %5816 = vst.msk [vmem:[%s7816_s28 + $0xb0] sm:$0xff] %vm508_vm2, %v5106_v51  ;;  %v6515_v32 = vpop.f32.mrb[71].mxu1 }
 0x4da   : > { %v5258_v35 = vpop.f32.mrb[72].mxu1 }
 0x4db   : > { %5818 = vst.msk [vmem:[%s7816_s28 + $0xc0] sm:$0xff] %vm508_vm2, %v5258_v35  ;;  %v6525_v2 = vpop.f32.mrb[73].mxu1 }
 0x4de   : > { %v5410_v46 = vpop.f32.mrb[74].mxu1  ;;  %v5790_v14 = vpop.f32.mrb[78].mxu0 }
 0x4df   : > { %5820 = vst.msk [vmem:[%s7816_s28 + $0xd0] sm:$0xff] %vm508_vm2, %v5410_v46  ;;  %5825 = vst.msk [vmem:[%s7816_s28 + $0xf8] sm:$0xff] %vm508_vm2, %v5790_v14  ;;  %v6535_v10 = vpop.f32.mrb[75].mxu1  ;;  %v6560_v58 = vpop.f32.mrb[79].mxu0 }
 0x4e2   : > { %v5562_v37 = vpop.f32.mrb[76].mxu1 }
 0x4e3   : > { %5822 = vst.msk [vmem:[%s7816_s28 + $0xe0] sm:$0xff] %vm508_vm2, %v5562_v37  ;;  %v6545_v42 = vpop.f32.mrb[77].mxu1 }
 0x4e6   : > { %v5714_v43 = vpop.f32.mrb[78].mxu1 }
 0x4e7   : > { %5824 = vst.msk [vmem:[%s7816_s28 + $0xf0] sm:$0xff] %vm508_vm2, %v5714_v43  ;;  %v6555_v47 = vpop.f32.mrb[79].mxu1 }
 0x4e8 PF: > { %s12_s9 = sadd.s32 1, %s6715_s9  }
 0x4e9   : > { %p9_p4 = scmp.ge.s32.totalorder %s12_s9, 4  }
 0x4eb   :  { %11 = sbr.rel (!%p9_p4) target bundleno = 1 (0x1), region = 58 }

</bundles_post_ra>
